<compile_context>
chip_gen: v7x
topology: tpu7x:2x2x1
jax: 0.10.0
libtpu: 0.0.40
codegen_flags: <defaults>
</compile_context>

<pallas_src>
import functools
import math

import jax
import jax.numpy as jnp
from jax import lax
from jax.experimental import pallas as pl
from jax.experimental.pallas import tpu as pltpu

STATE_DIM = 10
HIDDEN_DIM = 128
ACTION_DIM = 2
LN_EPS = 1e-5
LOG_SQRT_2PI = 0.5 * math.log(2.0 * math.pi)


def _softplus(x):
    # numerically stable softplus, same as F.softplus
    return jnp.where(x > 20.0, x, jnp.log1p(jnp.exp(jnp.minimum(x, 20.0))))


def _relu_layernorm(pre, gamma, beta, *, axis, bf16_elementwise):
    """ReLU -> LayerNorm over `axis` (the feature axis).

    Mean / variance accumulation and rsqrt always run in f32; the ReLU and the
    affine (h - mean) * inv * gamma + beta run in bf16 when
    bf16_elementwise=True (v6e/v7x: bf16 VALU processes packed [16,128] vregs,
    roughly halving pressure on the binding VALU slot; the result feeds a bf16
    MXU matmul anyway).  Use bf16_elementwise=False on v5e (no bf16 VALU).
    Returns bf16, ready for the next matmul.
    """
    if bf16_elementwise:
        h = jnp.maximum(pre.astype(jnp.bfloat16), 0.0)      # bf16 ReLU
        hf = h.astype(jnp.float32)                           # f32 for statistics
    else:
        hf = jnp.maximum(pre, 0.0)
        h = hf
    mean = jnp.mean(hf, axis=axis, keepdims=True)
    var = jnp.maximum(
        jnp.mean(hf * hf, axis=axis, keepdims=True) - mean * mean, 0.0)
    inv = lax.rsqrt(var + LN_EPS)
    if bf16_elementwise:
        out = ((h - mean.astype(jnp.bfloat16)) * inv.astype(jnp.bfloat16)
               * gamma.astype(jnp.bfloat16) + beta.astype(jnp.bfloat16))
    else:
        out = ((h - mean) * inv * gamma + beta).astype(jnp.bfloat16)
    return out


def policy_kernel(
    x_ref,                                  # [TB, STATE_DIM] f32 (native layout)
    w1_ref, b1_ref, g1_ref, be1_ref,        # [H,S] bf16, [H,1] f32 x3
    w2_ref, b2_ref, g2_ref, be2_ref,        # [H,H] bf16, [H,1] f32 x3
    wh_ref, bh_ref,                         # [2A,H] bf16, [2A,1] f32 (fused mu/std)
    eps_ref,                                # [A, TB] f32
    out_ref,                                # [2A, TB] f32: rows 0:A action, A:2A log_prob
    *, bf16_elementwise,
):
    x_bf = x_ref[...].astype(jnp.bfloat16)                   # [TB, S]

    # ---- layer1: Linear -> ReLU -> LayerNorm --------------------------------
    # Contract the shared feature axis of w1 [H,S] and x [TB,S] on the MXU,
    # producing the batch-on-lanes [H, TB] slab without an explicit transpose.
    pre1 = jnp.einsum("hs,bs->hb", w1_ref[...], x_bf,
                      preferred_element_type=jnp.float32) + b1_ref[...]
    h1 = _relu_layernorm(pre1, g1_ref[...], be1_ref[...],
                         axis=0, bf16_elementwise=bf16_elementwise)

    # ---- layer2: Linear -> ReLU -> LayerNorm --------------------------------
    pre2 = jnp.dot(w2_ref[...], h1,
                   preferred_element_type=jnp.float32) + b2_ref[...]
    h2 = _relu_layernorm(pre2, g2_ref[...], be2_ref[...],
                         axis=0, bf16_elementwise=bf16_elementwise)

    # ---- fused mu/std heads: one [2A, H] x [H, TB] matmul -------------------
    head = jnp.dot(wh_ref[...], h2,
                   preferred_element_type=jnp.float32) + bh_ref[...]
    mu = head[:ACTION_DIM, :]
    # Note: original module applies raw softplus (no log_std clamp); kept as-is
    # for spec fidelity even though std can underflow for very negative inputs.
    std = _softplus(head[ACTION_DIM:, :])

    # ---- reparameterized sample z = mu + std * eps --------------------------
    eps = eps_ref[...]
    z = mu + std * eps

    # ---- Normal(mu, std).log_prob(z) = -0.5*eps^2 - log(std) - log(sqrt(2pi))
    log_prob = -0.5 * eps * eps - jnp.log(std) - LOG_SQRT_2PI

    # ---- tanh squash + correction (same 1e-7 epsilon as the PyTorch module) -
    t = jnp.tanh(z)
    log_prob = log_prob - jnp.log(1.0 - t * t + 1e-07)

    # two lane-dense sub-slice stores (no concatenated temporary)
    out_ref[:ACTION_DIM, :] = t
    out_ref[ACTION_DIM:, :] = log_prob


def _round_up(n, m):
    return ((n + m - 1) // m) * m


def _pick_batch_tile(batch, desired=1024):
    """Batch tile on the 128-lane axis.

    Large tiles amortize the ~0.35us fixed per-grid-step cost (the per-step
    compute/DMA here is nanoseconds); the tile is capped so that at least two
    grid steps exist when the batch allows it, so the "parallel" batch axis
    can shard across both v7x TensorCores.  Falls back to 128 for tiny B.
    """
    bp = _round_up(max(batch, 1), 128)
    tb = min(desired, bp)
    if bp >= 256:
        tb = min(tb, _round_up(pl.cdiv(bp, 2), 128))
    return tb


def policy_net_forward(x, params, eps, *, tb=None, bf16_elementwise=True,
                       single_buffer_weights=True):
    """x: [B, STATE_DIM] f32, eps: [B, ACTION_DIM] f32 (rsample noise).

    Returns (action, log_prob), each [B, ACTION_DIM] f32.

    tb: batch tile (multiple of 128).  Default auto: 1024, capped to give
        >= 2 grid steps (v7x megacore); sweep 512-2048 for very large B.
        Per-step VMEM at tb=2048 is a few MB, far under the scoped default on
        every generation; only a tb of ~16K would stress v7x's 64 MiB VMEM.
    bf16_elementwise: ReLU + LayerNorm affine in bf16 (f32 statistics).
        Recommended on v6e/v7x; set False on v5e (no bf16 VALU).
    """
    B = x.shape[0]
    if tb is None:
        tb = _pick_batch_tile(B)
    n_tiles = pl.cdiv(B, tb)
    Bp = n_tiles * tb
    pad = Bp - B

    # x stays in its native [B, STATE_DIM] f32 layout: no wrapper
    # transpose/cast pass over x (that was a full extra HBM round-trip).
    x_p = jnp.pad(x, ((0, pad), (0, 0))) if pad else x               # [Bp, S]
    # eps is tiny (B x 2); transposing it here is negligible and keeps the
    # kernel free of an awkward [tb,2] -> [2,tb] in-kernel relayout.
    eps_t = (jnp.pad(eps, ((0, pad), (0, 0))) if pad else eps).T      # [A, Bp]
    eps_t = eps_t.astype(jnp.float32)

    flops = 2 * Bp * (STATE_DIM * HIDDEN_DIM
                      + HIDDEN_DIM * HIDDEN_DIM
                      + HIDDEN_DIM * 2 * ACTION_DIM)
    transcendentals = Bp * (2 + 6 * ACTION_DIM)   # 2x rsqrt + per-action exp/log/tanh
    bytes_accessed = (x_p.size * 4 + eps_t.size * 4
                      + 2 * ACTION_DIM * Bp * 4
                      + (STATE_DIM + HIDDEN_DIM + 2 * ACTION_DIM) * HIDDEN_DIM * 2
                      + (6 * HIDDEN_DIM + 2 * 2 * ACTION_DIM) * 4)

    def single_buffered(shape):
        # Constant-index (resident) operands: fetched once, single-buffered to
        # save VMEM + warm-up DMA descriptors.
        return pl.BlockSpec(shape, lambda i: (0, 0),
                            pipeline_mode=pl.Buffered(1))

    def default_buffered(shape):
        return pl.BlockSpec(shape, lambda i: (0, 0))

    def make_call(resident):
        in_specs = [
            pl.BlockSpec((tb, STATE_DIM), lambda i: (i, 0)),          # x tile
            resident((HIDDEN_DIM, STATE_DIM)),                        # w1
            resident((HIDDEN_DIM, 1)),                                # b1
            resident((HIDDEN_DIM, 1)),                                # gamma1
            resident((HIDDEN_DIM, 1)),                                # beta1
            resident((HIDDEN_DIM, HIDDEN_DIM)),                       # w2
            resident((HIDDEN_DIM, 1)),                                # b2
            resident((HIDDEN_DIM, 1)),                                # gamma2
            resident((HIDDEN_DIM, 1)),                                # beta2
            resident((2 * ACTION_DIM, HIDDEN_DIM)),                   # fused head W
            resident((2 * ACTION_DIM, 1)),                            # fused head b
            pl.BlockSpec((ACTION_DIM, tb), lambda i: (0, i)),         # eps tile
        ]
        return pl.pallas_call(
            functools.partial(policy_kernel, bf16_elementwise=bf16_elementwise),
            out_shape=jax.ShapeDtypeStruct((2 * ACTION_DIM, Bp), jnp.float32),
            grid_spec=pltpu.PrefetchScalarGridSpec(
                num_scalar_prefetch=0,
                grid=(n_tiles,),
                in_specs=in_specs,
                out_specs=pl.BlockSpec((2 * ACTION_DIM, tb), lambda i: (0, i)),
            ),
            compiler_params=pltpu.CompilerParams(
                dimension_semantics=("parallel",)),
            cost_estimate=pl.CostEstimate(
                flops=flops,
                transcendentals=transcendentals,
                bytes_accessed=bytes_accessed),
        )

    args = (x_p,
            params["w1"], params["b1"], params["g1"], params["be1"],
            params["w2"], params["b2"], params["g2"], params["be2"],
            params["wh"], params["bh"],
            eps_t)

    if single_buffer_weights:
        try:
            out = make_call(single_buffered)(*args)
        except Exception:
            # Compatibility fallback: rebuild with default (double) buffering
            # if Buffered(1) is rejected by this jax/Mosaic version.
            out = make_call(default_buffered)(*args)
    else:
        out = make_call(default_buffered)(*args)

    action = out[:ACTION_DIM, :B].T        # [B, A]
    log_prob = out[ACTION_DIM:, :B].T      # [B, A]
    return action, log_prob


def init_params(key):
    # PyTorch nn.Linear default init: U(-1/sqrt(fan_in), +1/sqrt(fan_in)).
    # Weights kept in the PyTorch [out, in] layout; matmul weights in bf16.
    ks = jax.random.split(key, 8)

    def lin(kw, kb, fan_in, fan_out):
        bound = 1.0 / math.sqrt(fan_in)
        w = jax.random.uniform(kw, (fan_out, fan_in), jnp.float32, -bound, bound)
        b = jax.random.uniform(kb, (fan_out, 1), jnp.float32, -bound, bound)
        return w, b

    w1, b1 = lin(ks[0], ks[1], STATE_DIM, HIDDEN_DIM)
    w2, b2 = lin(ks[2], ks[3], HIDDEN_DIM, HIDDEN_DIM)
    wmu, bmu = lin(ks[4], ks[5], HIDDEN_DIM, ACTION_DIM)
    wstd, bstd = lin(ks[6], ks[7], HIDDEN_DIM, ACTION_DIM)

    return dict(
        w1=w1.astype(jnp.bfloat16), b1=b1,
        g1=jnp.ones((HIDDEN_DIM, 1), jnp.float32),
        be1=jnp.zeros((HIDDEN_DIM, 1), jnp.float32),
        w2=w2.astype(jnp.bfloat16), b2=b2,
        g2=jnp.ones((HIDDEN_DIM, 1), jnp.float32),
        be2=jnp.zeros((HIDDEN_DIM, 1), jnp.float32),
        wh=jnp.concatenate([wmu, wstd], axis=0).astype(jnp.bfloat16),  # [2A, H]
        bh=jnp.concatenate([bmu, bstd], axis=0),                       # [2A, 1]
    )


def reference_forward(x, params, eps, *, bf16_elementwise=True):
    # Pure-JAX reference mirroring the kernel's mixed precision (bf16 matmul
    # inputs with f32 accumulation, bf16 ReLU / LN affine with f32 stats).
    # Against a pure-f32 PyTorch forward the deviation is O(1e-2), bounded by
    # bf16 rounding of the matmul inputs.
    def lin(h_bf, w, b):               # h_bf [B,in] bf16, w bf16 [out,in], b [out,1]
        return jnp.dot(h_bf, w.T,
                       preferred_element_type=jnp.float32) + b[:, 0]

    h1 = _relu_layernorm(lin(x.astype(jnp.bfloat16), params["w1"], params["b1"]),
                         params["g1"][:, 0], params["be1"][:, 0],
                         axis=-1, bf16_elementwise=bf16_elementwise)
    h2 = _relu_layernorm(lin(h1, params["w2"], params["b2"]),
                         params["g2"][:, 0], params["be2"][:, 0],
                         axis=-1, bf16_elementwise=bf16_elementwise)
    head = lin(h2, params["wh"], params["bh"])
    mu = head[:, :ACTION_DIM]
    std = _softplus(head[:, ACTION_DIM:])
    z = mu + std * eps
    lp = -0.5 * eps * eps - jnp.log(std) - LOG_SQRT_2PI
    a = jnp.tanh(z)
    lp = lp - jnp.log(1.0 - a * a + 1e-07)
    return a, lp


if __name__ == "__main__":
    key = jax.random.PRNGKey(0)
    k_param, k_x, k_eps = jax.random.split(key, 3)

    B = 8
    x = jax.random.normal(k_x, (B, STATE_DIM), jnp.float32)
    eps = jax.random.normal(k_eps, (B, ACTION_DIM), jnp.float32)  # rsample noise
    params = init_params(k_param)

    action, log_prob = policy_net_forward(x, params, eps)
    jax.block_until_ready((action, log_prob))

    a_ref, lp_ref = reference_forward(x, params, eps)
    assert action.shape == (B, ACTION_DIM) and log_prob.shape == (B, ACTION_DIM)
    assert bool(jnp.all(jnp.isfinite(action))) and bool(jnp.all(jnp.isfinite(log_prob)))
    assert jnp.allclose(action, a_ref, atol=2.5e-2, rtol=2.5e-2), \
        float(jnp.max(jnp.abs(action - a_ref)))
    assert jnp.allclose(log_prob, lp_ref, atol=2.5e-2, rtol=2.5e-2), \
        float(jnp.max(jnp.abs(log_prob - lp_ref)))

    print("KERNEL_OK")
</pallas_src>

<mosaic_0001>
module attributes {stable_mosaic.version = 11 : i64} {
  func.func @policy_kernel(%arg0: i32, %arg1: memref<128x10xf32, #tpu.memory_space<vmem>>, %arg2: memref<128x10xbf16, #tpu.memory_space<vmem>>, %arg3: memref<128x1xf32, #tpu.memory_space<vmem>>, %arg4: memref<128x1xf32, #tpu.memory_space<vmem>>, %arg5: memref<128x1xf32, #tpu.memory_space<vmem>>, %arg6: memref<128x128xbf16, #tpu.memory_space<vmem>>, %arg7: memref<128x1xf32, #tpu.memory_space<vmem>>, %arg8: memref<128x1xf32, #tpu.memory_space<vmem>>, %arg9: memref<128x1xf32, #tpu.memory_space<vmem>>, %arg10: memref<4x128xbf16, #tpu.memory_space<vmem>>, %arg11: memref<4x1xf32, #tpu.memory_space<vmem>>, %arg12: memref<2x128xf32, #tpu.memory_space<vmem>>, %arg13: memref<4x128xf32, #tpu.memory_space<vmem>>) attributes {dimension_semantics = [#tpu.dimension_semantics<parallel>], iteration_bounds = array<i64: 1>, scalar_prefetch = 0 : i64, scratch_operands = 0 : i64, tpu.core_type = #tpu.core_type<tc>, window_params = [{transform_indices = @transform_0, window_bounds = array<i64: 128, 10>}, {pipeline_mode = #tpu.pipeline_mode<synchronous>, transform_indices = @transform_1, window_bounds = array<i64: 128, 10>}, {pipeline_mode = #tpu.pipeline_mode<synchronous>, transform_indices = @transform_2, window_bounds = array<i64: 128, 1>}, {pipeline_mode = #tpu.pipeline_mode<synchronous>, transform_indices = @transform_3, window_bounds = array<i64: 128, 1>}, {pipeline_mode = #tpu.pipeline_mode<synchronous>, transform_indices = @transform_4, window_bounds = array<i64: 128, 1>}, {pipeline_mode = #tpu.pipeline_mode<synchronous>, transform_indices = @transform_5, window_bounds = array<i64: 128, 128>}, {pipeline_mode = #tpu.pipeline_mode<synchronous>, transform_indices = @transform_6, window_bounds = array<i64: 128, 1>}, {pipeline_mode = #tpu.pipeline_mode<synchronous>, transform_indices = @transform_7, window_bounds = array<i64: 128, 1>}, {pipeline_mode = #tpu.pipeline_mode<synchronous>, transform_indices = @transform_8, window_bounds = array<i64: 128, 1>}, {pipeline_mode = #tpu.pipeline_mode<synchronous>, transform_indices = @transform_9, window_bounds = array<i64: 4, 128>}, {pipeline_mode = #tpu.pipeline_mode<synchronous>, transform_indices = @transform_10, window_bounds = array<i64: 4, 1>}, {transform_indices = @transform_11, window_bounds = array<i64: 2, 128>}, {transform_indices = @transform_12, window_bounds = array<i64: 4, 128>}]} {
    %c0 = arith.constant 0 : index
    %c0_0 = arith.constant 0 : index
    %0 = vector.load %arg1[%c0, %c0_0] : memref<128x10xf32, #tpu.memory_space<vmem>>, vector<128x10xf32>
    %1 = arith.truncf %0 : vector<128x10xf32> to vector<128x10xbf16>
    %c0_1 = arith.constant 0 : index
    %c0_2 = arith.constant 0 : index
    %2 = vector.load %arg2[%c0_1, %c0_2] : memref<128x10xbf16, #tpu.memory_space<vmem>>, vector<128x10xbf16>
    "tpu.trace_start"() <{level = 10 : i32, message = "hs,bs->hb"}> : () -> ()
    %cst = arith.constant dense<0.000000e+00> : vector<128x128xf32>
    %3 = tpu.matmul %2, %1, %cst {dimension_numbers = #tpu.dot_dimension_numbers<[1], [1], [0], [0], [0, 0, 1, 0], [], []>} : vector<128x10xbf16>, vector<128x10xbf16>, vector<128x128xf32> -> vector<128x128xf32>
    "tpu.trace_stop"() : () -> ()
    %c0_3 = arith.constant 0 : index
    %c0_4 = arith.constant 0 : index
    %4 = vector.load %arg3[%c0_3, %c0_4] : memref<128x1xf32, #tpu.memory_space<vmem>>, vector<128x1xf32>
    %5 = vector.broadcast %4 : vector<128x1xf32> to vector<128x128xf32>
    %6 = arith.addf %3, %5 : vector<128x128xf32>
    %c0_5 = arith.constant 0 : index
    %c0_6 = arith.constant 0 : index
    %7 = vector.load %arg4[%c0_5, %c0_6] : memref<128x1xf32, #tpu.memory_space<vmem>>, vector<128x1xf32>
    %c0_7 = arith.constant 0 : index
    %c0_8 = arith.constant 0 : index
    %8 = vector.load %arg5[%c0_7, %c0_8] : memref<128x1xf32, #tpu.memory_space<vmem>>, vector<128x1xf32>
    %9 = arith.truncf %6 : vector<128x128xf32> to vector<128x128xbf16>
    %cst_9 = arith.constant 0.000000e+00 : bf16
    %10 = vector.broadcast %cst_9 : bf16 to vector<128x128xbf16>
    %11 = arith.maximumf %9, %10 : vector<128x128xbf16>
    %12 = arith.extf %11 : vector<128x128xbf16> to vector<128x128xf32>
    %cst_10 = arith.constant dense<0.000000e+00> : vector<128xf32>
    %13 = vector.multi_reduction <add>, %12, %cst_10 [0] : vector<128x128xf32> to vector<128xf32>
    %14 = vector.shape_cast %13 : vector<128xf32> to vector<1x128xf32>
    %cst_11 = arith.constant 1.280000e+02 : f32
    %15 = vector.broadcast %cst_11 : f32 to vector<1x128xf32>
    %16 = arith.divf %14, %15 : vector<1x128xf32>
    %17 = arith.mulf %12, %12 : vector<128x128xf32>
    %cst_12 = arith.constant dense<0.000000e+00> : vector<128xf32>
    %18 = vector.multi_reduction <add>, %17, %cst_12 [0] : vector<128x128xf32> to vector<128xf32>
    %19 = vector.shape_cast %18 : vector<128xf32> to vector<1x128xf32>
    %cst_13 = arith.constant 1.280000e+02 : f32
    %20 = vector.broadcast %cst_13 : f32 to vector<1x128xf32>
    %21 = arith.divf %19, %20 : vector<1x128xf32>
    %22 = arith.mulf %16, %16 : vector<1x128xf32>
    %23 = arith.subf %21, %22 : vector<1x128xf32>
    %cst_14 = arith.constant 0.000000e+00 : f32
    %24 = vector.broadcast %cst_14 : f32 to vector<1x128xf32>
    %25 = arith.maximumf %23, %24 : vector<1x128xf32>
    %cst_15 = arith.constant 9.99999974E-6 : f32
    %26 = vector.broadcast %cst_15 : f32 to vector<1x128xf32>
    %27 = arith.addf %25, %26 : vector<1x128xf32>
    %28 = math.rsqrt %27 : vector<1x128xf32>
    %29 = arith.truncf %16 : vector<1x128xf32> to vector<1x128xbf16>
    %30 = vector.broadcast %29 : vector<1x128xbf16> to vector<128x128xbf16>
    %31 = arith.subf %11, %30 : vector<128x128xbf16>
    %32 = arith.truncf %28 : vector<1x128xf32> to vector<1x128xbf16>
    %33 = vector.broadcast %32 : vector<1x128xbf16> to vector<128x128xbf16>
    %34 = arith.mulf %31, %33 : vector<128x128xbf16>
    %35 = arith.truncf %7 : vector<128x1xf32> to vector<128x1xbf16>
    %36 = vector.broadcast %35 : vector<128x1xbf16> to vector<128x128xbf16>
    %37 = arith.mulf %34, %36 : vector<128x128xbf16>
    %38 = arith.truncf %8 : vector<128x1xf32> to vector<128x1xbf16>
    %39 = vector.broadcast %38 : vector<128x1xbf16> to vector<128x128xbf16>
    %40 = arith.addf %37, %39 : vector<128x128xbf16>
    %c0_16 = arith.constant 0 : index
    %c0_17 = arith.constant 0 : index
    %41 = vector.load %arg6[%c0_16, %c0_17] : memref<128x128xbf16, #tpu.memory_space<vmem>>, vector<128x128xbf16>
    %cst_18 = arith.constant dense<0.000000e+00> : vector<128x128xf32>
    %42 = tpu.matmul %41, %40, %cst_18 {dimension_numbers = #tpu.dot_dimension_numbers<[1], [0], [0], [1], [0, 0, 1, 1], [], []>} : vector<128x128xbf16>, vector<128x128xbf16>, vector<128x128xf32> -> vector<128x128xf32>
    %c0_19 = arith.constant 0 : index
    %c0_20 = arith.constant 0 : index
    %43 = vector.load %arg7[%c0_19, %c0_20] : memref<128x1xf32, #tpu.memory_space<vmem>>, vector<128x1xf32>
    %44 = vector.broadcast %43 : vector<128x1xf32> to vector<128x128xf32>
    %45 = arith.addf %42, %44 : vector<128x128xf32>
    %c0_21 = arith.constant 0 : index
    %c0_22 = arith.constant 0 : index
    %46 = vector.load %arg8[%c0_21, %c0_22] : memref<128x1xf32, #tpu.memory_space<vmem>>, vector<128x1xf32>
    %c0_23 = arith.constant 0 : index
    %c0_24 = arith.constant 0 : index
    %47 = vector.load %arg9[%c0_23, %c0_24] : memref<128x1xf32, #tpu.memory_space<vmem>>, vector<128x1xf32>
    %48 = arith.truncf %45 : vector<128x128xf32> to vector<128x128xbf16>
    %cst_25 = arith.constant 0.000000e+00 : bf16
    %49 = vector.broadcast %cst_25 : bf16 to vector<128x128xbf16>
    %50 = arith.maximumf %48, %49 : vector<128x128xbf16>
    %51 = arith.extf %50 : vector<128x128xbf16> to vector<128x128xf32>
    %cst_26 = arith.constant dense<0.000000e+00> : vector<128xf32>
    %52 = vector.multi_reduction <add>, %51, %cst_26 [0] : vector<128x128xf32> to vector<128xf32>
    %53 = vector.shape_cast %52 : vector<128xf32> to vector<1x128xf32>
    %cst_27 = arith.constant 1.280000e+02 : f32
    %54 = vector.broadcast %cst_27 : f32 to vector<1x128xf32>
    %55 = arith.divf %53, %54 : vector<1x128xf32>
    %56 = arith.mulf %51, %51 : vector<128x128xf32>
    %cst_28 = arith.constant dense<0.000000e+00> : vector<128xf32>
    %57 = vector.multi_reduction <add>, %56, %cst_28 [0] : vector<128x128xf32> to vector<128xf32>
    %58 = vector.shape_cast %57 : vector<128xf32> to vector<1x128xf32>
    %cst_29 = arith.constant 1.280000e+02 : f32
    %59 = vector.broadcast %cst_29 : f32 to vector<1x128xf32>
    %60 = arith.divf %58, %59 : vector<1x128xf32>
    %61 = arith.mulf %55, %55 : vector<1x128xf32>
    %62 = arith.subf %60, %61 : vector<1x128xf32>
    %cst_30 = arith.constant 0.000000e+00 : f32
    %63 = vector.broadcast %cst_30 : f32 to vector<1x128xf32>
    %64 = arith.maximumf %62, %63 : vector<1x128xf32>
    %cst_31 = arith.constant 9.99999974E-6 : f32
    %65 = vector.broadcast %cst_31 : f32 to vector<1x128xf32>
    %66 = arith.addf %64, %65 : vector<1x128xf32>
    %67 = math.rsqrt %66 : vector<1x128xf32>
    %68 = arith.truncf %55 : vector<1x128xf32> to vector<1x128xbf16>
    %69 = vector.broadcast %68 : vector<1x128xbf16> to vector<128x128xbf16>
    %70 = arith.subf %50, %69 : vector<128x128xbf16>
    %71 = arith.truncf %67 : vector<1x128xf32> to vector<1x128xbf16>
    %72 = vector.broadcast %71 : vector<1x128xbf16> to vector<128x128xbf16>
    %73 = arith.mulf %70, %72 : vector<128x128xbf16>
    %74 = arith.truncf %46 : vector<128x1xf32> to vector<128x1xbf16>
    %75 = vector.broadcast %74 : vector<128x1xbf16> to vector<128x128xbf16>
    %76 = arith.mulf %73, %75 : vector<128x128xbf16>
    %77 = arith.truncf %47 : vector<128x1xf32> to vector<128x1xbf16>
    %78 = vector.broadcast %77 : vector<128x1xbf16> to vector<128x128xbf16>
    %79 = arith.addf %76, %78 : vector<128x128xbf16>
    %c0_32 = arith.constant 0 : index
    %c0_33 = arith.constant 0 : index
    %80 = vector.load %arg10[%c0_32, %c0_33] : memref<4x128xbf16, #tpu.memory_space<vmem>>, vector<4x128xbf16>
    %cst_34 = arith.constant dense<0.000000e+00> : vector<4x128xf32>
    %81 = tpu.matmul %80, %79, %cst_34 {dimension_numbers = #tpu.dot_dimension_numbers<[1], [0], [0], [1], [0, 0, 1, 1], [], []>} : vector<4x128xbf16>, vector<128x128xbf16>, vector<4x128xf32> -> vector<4x128xf32>
    %c0_35 = arith.constant 0 : index
    %c0_36 = arith.constant 0 : index
    %82 = vector.load %arg11[%c0_35, %c0_36] : memref<4x1xf32, #tpu.memory_space<vmem>>, vector<4x1xf32>
    %83 = vector.broadcast %82 : vector<4x1xf32> to vector<4x128xf32>
    %84 = arith.addf %81, %83 : vector<4x128xf32>
    %85 = vector.extract_strided_slice %84 {offsets = [0, 0], sizes = [2, 128], strides = [1, 1]} : vector<4x128xf32> to vector<2x128xf32>
    %86 = vector.extract_strided_slice %84 {offsets = [2, 0], sizes = [2, 128], strides = [1, 1]} : vector<4x128xf32> to vector<2x128xf32>
    %cst_37 = arith.constant 2.000000e+01 : f32
    %87 = vector.broadcast %cst_37 : f32 to vector<2x128xf32>
    %88 = arith.cmpf ogt, %86, %87 : vector<2x128xf32>
    %cst_38 = arith.constant 2.000000e+01 : f32
    %89 = vector.broadcast %cst_38 : f32 to vector<2x128xf32>
    %90 = arith.minimumf %86, %89 : vector<2x128xf32>
    %91 = math.exp %90 : vector<2x128xf32>
    %92 = math.log1p %91 : vector<2x128xf32>
    %93 = arith.select %88, %86, %92 : vector<2x128xi1>, vector<2x128xf32>
    %c0_39 = arith.constant 0 : index
    %c0_40 = arith.constant 0 : index
    %94 = vector.load %arg12[%c0_39, %c0_40] : memref<2x128xf32, #tpu.memory_space<vmem>>, vector<2x128xf32>
    %95 = arith.mulf %93, %94 : vector<2x128xf32>
    %96 = arith.addf %85, %95 : vector<2x128xf32>
    %cst_41 = arith.constant -5.000000e-01 : f32
    %97 = vector.broadcast %cst_41 : f32 to vector<2x128xf32>
    %98 = arith.mulf %97, %94 : vector<2x128xf32>
    %99 = arith.mulf %98, %94 : vector<2x128xf32>
    %100 = math.log %93 : vector<2x128xf32>
    %101 = arith.subf %99, %100 : vector<2x128xf32>
    %cst_42 = arith.constant 0.918938517 : f32
    %102 = vector.broadcast %cst_42 : f32 to vector<2x128xf32>
    %103 = arith.subf %101, %102 : vector<2x128xf32>
    %104 = math.tanh %96 : vector<2x128xf32>
    %105 = arith.mulf %104, %104 : vector<2x128xf32>
    %cst_43 = arith.constant 1.000000e+00 : f32
    %106 = vector.broadcast %cst_43 : f32 to vector<2x128xf32>
    %107 = arith.subf %106, %105 : vector<2x128xf32>
    %cst_44 = arith.constant 1.000000e-07 : f32
    %108 = vector.broadcast %cst_44 : f32 to vector<2x128xf32>
    %109 = arith.addf %107, %108 : vector<2x128xf32>
    %110 = math.log %109 : vector<2x128xf32>
    %111 = arith.subf %103, %110 : vector<2x128xf32>
    %c0_45 = arith.constant 0 : index
    %c0_46 = arith.constant 0 : index
    %112 = vector.load %arg13[%c0_45, %c0_46] : memref<4x128xf32, #tpu.memory_space<vmem>>, vector<2x128xf32>
    tpu.vector_store %arg13[%c0_45, %c0_46], %104 {strides = array<i32>} : memref<4x128xf32, #tpu.memory_space<vmem>>, vector<2x128xf32>,
    %c2 = arith.constant 2 : index
    %c0_47 = arith.constant 0 : index
    %113 = vector.load %arg13[%c2, %c0_47] : memref<4x128xf32, #tpu.memory_space<vmem>>, vector<2x128xf32>
    tpu.vector_store %arg13[%c2, %c0_47], %111 {strides = array<i32>} : memref<4x128xf32, #tpu.memory_space<vmem>>, vector<2x128xf32>,
    return
  }
  func.func @transform_0(%arg0: i32) -> (i32, i32) {
    %c0_i32 = arith.constant 0 : i32
    %c0_i32_0 = arith.constant 0 : i32
    return %arg0, %c0_i32 : i32, i32
  }
  func.func @transform_1(%arg0: i32) -> (i32, i32) {
    %c0_i32 = arith.constant 0 : i32
    %c0_i32_0 = arith.constant 0 : i32
    %c0_i32_1 = arith.constant 0 : i32
    return %c0_i32, %c0_i32_0 : i32, i32
  }
  func.func @transform_2(%arg0: i32) -> (i32, i32) {
    %c0_i32 = arith.constant 0 : i32
    %c0_i32_0 = arith.constant 0 : i32
    %c0_i32_1 = arith.constant 0 : i32
    return %c0_i32, %c0_i32_0 : i32, i32
  }
  func.func @transform_3(%arg0: i32) -> (i32, i32) {
    %c0_i32 = arith.constant 0 : i32
    %c0_i32_0 = arith.constant 0 : i32
    %c0_i32_1 = arith.constant 0 : i32
    return %c0_i32, %c0_i32_0 : i32, i32
  }
  func.func @transform_4(%arg0: i32) -> (i32, i32) {
    %c0_i32 = arith.constant 0 : i32
    %c0_i32_0 = arith.constant 0 : i32
    %c0_i32_1 = arith.constant 0 : i32
    return %c0_i32, %c0_i32_0 : i32, i32
  }
  func.func @transform_5(%arg0: i32) -> (i32, i32) {
    %c0_i32 = arith.constant 0 : i32
    %c0_i32_0 = arith.constant 0 : i32
    %c0_i32_1 = arith.constant 0 : i32
    return %c0_i32, %c0_i32_0 : i32, i32
  }
  func.func @transform_6(%arg0: i32) -> (i32, i32) {
    %c0_i32 = arith.constant 0 : i32
    %c0_i32_0 = arith.constant 0 : i32
    %c0_i32_1 = arith.constant 0 : i32
    return %c0_i32, %c0_i32_0 : i32, i32
  }
  func.func @transform_7(%arg0: i32) -> (i32, i32) {
    %c0_i32 = arith.constant 0 : i32
    %c0_i32_0 = arith.constant 0 : i32
    %c0_i32_1 = arith.constant 0 : i32
    return %c0_i32, %c0_i32_0 : i32, i32
  }
  func.func @transform_8(%arg0: i32) -> (i32, i32) {
    %c0_i32 = arith.constant 0 : i32
    %c0_i32_0 = arith.constant 0 : i32
    %c0_i32_1 = arith.constant 0 : i32
    return %c0_i32, %c0_i32_0 : i32, i32
  }
  func.func @transform_9(%arg0: i32) -> (i32, i32) {
    %c0_i32 = arith.constant 0 : i32
    %c0_i32_0 = arith.constant 0 : i32
    %c0_i32_1 = arith.constant 0 : i32
    return %c0_i32, %c0_i32_0 : i32, i32
  }
  func.func @transform_10(%arg0: i32) -> (i32, i32) {
    %c0_i32 = arith.constant 0 : i32
    %c0_i32_0 = arith.constant 0 : i32
    %c0_i32_1 = arith.constant 0 : i32
    return %c0_i32, %c0_i32_0 : i32, i32
  }
  func.func @transform_11(%arg0: i32) -> (i32, i32) {
    %c0_i32 = arith.constant 0 : i32
    %c0_i32_0 = arith.constant 0 : i32
    return %c0_i32, %arg0 : i32, i32
  }
  func.func @transform_12(%arg0: i32) -> (i32, i32) {
    %c0_i32 = arith.constant 0 : i32
    %c0_i32_0 = arith.constant 0 : i32
    return %c0_i32, %arg0 : i32, i32
  }
}

module attributes {stable_mosaic.version = 11 : i64} {
  func.func @policy_kernel(%arg0: i32, %arg1: memref<128x10xf32, #tpu.memory_space<vmem>>, %arg2: memref<128x10xbf16, #tpu.memory_space<vmem>>, %arg3: memref<128x1xf32, #tpu.memory_space<vmem>>, %arg4: memref<128x1xf32, #tpu.memory_space<vmem>>, %arg5: memref<128x1xf32, #tpu.memory_space<vmem>>, %arg6: memref<128x128xbf16, #tpu.memory_space<vmem>>, %arg7: memref<128x1xf32, #tpu.memory_space<vmem>>, %arg8: memref<128x1xf32, #tpu.memory_space<vmem>>, %arg9: memref<128x1xf32, #tpu.memory_space<vmem>>, %arg10: memref<4x128xbf16, #tpu.memory_space<vmem>>, %arg11: memref<4x1xf32, #tpu.memory_space<vmem>>, %arg12: memref<2x128xf32, #tpu.memory_space<vmem>>, %arg13: memref<4x128xf32, #tpu.memory_space<vmem>>) attributes {dimension_semantics = [#tpu.dimension_semantics<parallel>], iteration_bounds = array<i64: 1>, scalar_prefetch = 0 : i64, scratch_operands = 0 : i64, tpu.core_type = #tpu.core_type<tc>, window_params = [{transform_indices = @transform_0, window_bounds = array<i64: 128, 10>}, {pipeline_mode = #tpu.pipeline_mode<synchronous>, transform_indices = @transform_1, window_bounds = array<i64: 128, 10>}, {pipeline_mode = #tpu.pipeline_mode<synchronous>, transform_indices = @transform_2, window_bounds = array<i64: 128, 1>}, {pipeline_mode = #tpu.pipeline_mode<synchronous>, transform_indices = @transform_3, window_bounds = array<i64: 128, 1>}, {pipeline_mode = #tpu.pipeline_mode<synchronous>, transform_indices = @transform_4, window_bounds = array<i64: 128, 1>}, {pipeline_mode = #tpu.pipeline_mode<synchronous>, transform_indices = @transform_5, window_bounds = array<i64: 128, 128>}, {pipeline_mode = #tpu.pipeline_mode<synchronous>, transform_indices = @transform_6, window_bounds = array<i64: 128, 1>}, {pipeline_mode = #tpu.pipeline_mode<synchronous>, transform_indices = @transform_7, window_bounds = array<i64: 128, 1>}, {pipeline_mode = #tpu.pipeline_mode<synchronous>, transform_indices = @transform_8, window_bounds = array<i64: 128, 1>}, {pipeline_mode = #tpu.pipeline_mode<synchronous>, transform_indices = @transform_9, window_bounds = array<i64: 4, 128>}, {pipeline_mode = #tpu.pipeline_mode<synchronous>, transform_indices = @transform_10, window_bounds = array<i64: 4, 1>}, {transform_indices = @transform_11, window_bounds = array<i64: 2, 128>}, {transform_indices = @transform_12, window_bounds = array<i64: 4, 128>}]} {
    %c0 = arith.constant 0 : index
    %c0_0 = arith.constant 0 : index
    %0 = vector.load %arg1[%c0, %c0_0] : memref<128x10xf32, #tpu.memory_space<vmem>>, vector<128x10xf32>
    %1 = arith.truncf %0 : vector<128x10xf32> to vector<128x10xbf16>
    %c0_1 = arith.constant 0 : index
    %c0_2 = arith.constant 0 : index
    %2 = vector.load %arg2[%c0_1, %c0_2] : memref<128x10xbf16, #tpu.memory_space<vmem>>, vector<128x10xbf16>
    "tpu.trace_start"() <{level = 10 : i32, message = "hs,bs->hb"}> : () -> ()
    %cst = arith.constant dense<0.000000e+00> : vector<128x128xf32>
    %3 = tpu.matmul %2, %1, %cst {dimension_numbers = #tpu.dot_dimension_numbers<[1], [1], [0], [0], [0, 0, 1, 0], [], []>} : vector<128x10xbf16>, vector<128x10xbf16>, vector<128x128xf32> -> vector<128x128xf32>
    "tpu.trace_stop"() : () -> ()
    %c0_3 = arith.constant 0 : index
    %c0_4 = arith.constant 0 : index
    %4 = vector.load %arg3[%c0_3, %c0_4] : memref<128x1xf32, #tpu.memory_space<vmem>>, vector<128x1xf32>
    %5 = vector.broadcast %4 : vector<128x1xf32> to vector<128x128xf32>
    %6 = arith.addf %3, %5 : vector<128x128xf32>
    %c0_5 = arith.constant 0 : index
    %c0_6 = arith.constant 0 : index
    %7 = vector.load %arg4[%c0_5, %c0_6] : memref<128x1xf32, #tpu.memory_space<vmem>>, vector<128x1xf32>
    %c0_7 = arith.constant 0 : index
    %c0_8 = arith.constant 0 : index
    %8 = vector.load %arg5[%c0_7, %c0_8] : memref<128x1xf32, #tpu.memory_space<vmem>>, vector<128x1xf32>
    %9 = arith.truncf %6 : vector<128x128xf32> to vector<128x128xbf16>
    %cst_9 = arith.constant 0.000000e+00 : bf16
    %10 = vector.broadcast %cst_9 : bf16 to vector<128x128xbf16>
    %11 = arith.maximumf %9, %10 : vector<128x128xbf16>
    %12 = arith.extf %11 : vector<128x128xbf16> to vector<128x128xf32>
    %cst_10 = arith.constant dense<0.000000e+00> : vector<128xf32>
    %13 = vector.multi_reduction <add>, %12, %cst_10 [0] : vector<128x128xf32> to vector<128xf32>
    %14 = vector.shape_cast %13 : vector<128xf32> to vector<1x128xf32>
    %cst_11 = arith.constant 1.280000e+02 : f32
    %15 = vector.broadcast %cst_11 : f32 to vector<1x128xf32>
    %16 = arith.divf %14, %15 : vector<1x128xf32>
    %17 = arith.mulf %12, %12 : vector<128x128xf32>
    %cst_12 = arith.constant dense<0.000000e+00> : vector<128xf32>
    %18 = vector.multi_reduction <add>, %17, %cst_12 [0] : vector<128x128xf32> to vector<128xf32>
    %19 = vector.shape_cast %18 : vector<128xf32> to vector<1x128xf32>
    %cst_13 = arith.constant 1.280000e+02 : f32
    %20 = vector.broadcast %cst_13 : f32 to vector<1x128xf32>
    %21 = arith.divf %19, %20 : vector<1x128xf32>
    %22 = arith.mulf %16, %16 : vector<1x128xf32>
    %23 = arith.subf %21, %22 : vector<1x128xf32>
    %cst_14 = arith.constant 0.000000e+00 : f32
    %24 = vector.broadcast %cst_14 : f32 to vector<1x128xf32>
    %25 = arith.maximumf %23, %24 : vector<1x128xf32>
    %cst_15 = arith.constant 9.99999974E-6 : f32
    %26 = vector.broadcast %cst_15 : f32 to vector<1x128xf32>
    %27 = arith.addf %25, %26 : vector<1x128xf32>
    %28 = math.rsqrt %27 : vector<1x128xf32>
    %29 = arith.truncf %16 : vector<1x128xf32> to vector<1x128xbf16>
    %30 = vector.broadcast %29 : vector<1x128xbf16> to vector<128x128xbf16>
    %31 = arith.subf %11, %30 : vector<128x128xbf16>
    %32 = arith.truncf %28 : vector<1x128xf32> to vector<1x128xbf16>
    %33 = vector.broadcast %32 : vector<1x128xbf16> to vector<128x128xbf16>
    %34 = arith.mulf %31, %33 : vector<128x128xbf16>
    %35 = arith.truncf %7 : vector<128x1xf32> to vector<128x1xbf16>
    %36 = vector.broadcast %35 : vector<128x1xbf16> to vector<128x128xbf16>
    %37 = arith.mulf %34, %36 : vector<128x128xbf16>
    %38 = arith.truncf %8 : vector<128x1xf32> to vector<128x1xbf16>
    %39 = vector.broadcast %38 : vector<128x1xbf16> to vector<128x128xbf16>
    %40 = arith.addf %37, %39 : vector<128x128xbf16>
    %c0_16 = arith.constant 0 : index
    %c0_17 = arith.constant 0 : index
    %41 = vector.load %arg6[%c0_16, %c0_17] : memref<128x128xbf16, #tpu.memory_space<vmem>>, vector<128x128xbf16>
    %cst_18 = arith.constant dense<0.000000e+00> : vector<128x128xf32>
    %42 = tpu.matmul %41, %40, %cst_18 {dimension_numbers = #tpu.dot_dimension_numbers<[1], [0], [0], [1], [0, 0, 1, 1], [], []>} : vector<128x128xbf16>, vector<128x128xbf16>, vector<128x128xf32> -> vector<128x128xf32>
    %c0_19 = arith.constant 0 : index
    %c0_20 = arith.constant 0 : index
    %43 = vector.load %arg7[%c0_19, %c0_20] : memref<128x1xf32, #tpu.memory_space<vmem>>, vector<128x1xf32>
    %44 = vector.broadcast %43 : vector<128x1xf32> to vector<128x128xf32>
    %45 = arith.addf %42, %44 : vector<128x128xf32>
    %c0_21 = arith.constant 0 : index
    %c0_22 = arith.constant 0 : index
    %46 = vector.load %arg8[%c0_21, %c0_22] : memref<128x1xf32, #tpu.memory_space<vmem>>, vector<128x1xf32>
    %c0_23 = arith.constant 0 : index
    %c0_24 = arith.constant 0 : index
    %47 = vector.load %arg9[%c0_23, %c0_24] : memref<128x1xf32, #tpu.memory_space<vmem>>, vector<128x1xf32>
    %48 = arith.truncf %45 : vector<128x128xf32> to vector<128x128xbf16>
    %cst_25 = arith.constant 0.000000e+00 : bf16
    %49 = vector.broadcast %cst_25 : bf16 to vector<128x128xbf16>
    %50 = arith.maximumf %48, %49 : vector<128x128xbf16>
    %51 = arith.extf %50 : vector<128x128xbf16> to vector<128x128xf32>
    %cst_26 = arith.constant dense<0.000000e+00> : vector<128xf32>
    %52 = vector.multi_reduction <add>, %51, %cst_26 [0] : vector<128x128xf32> to vector<128xf32>
    %53 = vector.shape_cast %52 : vector<128xf32> to vector<1x128xf32>
    %cst_27 = arith.constant 1.280000e+02 : f32
    %54 = vector.broadcast %cst_27 : f32 to vector<1x128xf32>
    %55 = arith.divf %53, %54 : vector<1x128xf32>
    %56 = arith.mulf %51, %51 : vector<128x128xf32>
    %cst_28 = arith.constant dense<0.000000e+00> : vector<128xf32>
    %57 = vector.multi_reduction <add>, %56, %cst_28 [0] : vector<128x128xf32> to vector<128xf32>
    %58 = vector.shape_cast %57 : vector<128xf32> to vector<1x128xf32>
    %cst_29 = arith.constant 1.280000e+02 : f32
    %59 = vector.broadcast %cst_29 : f32 to vector<1x128xf32>
    %60 = arith.divf %58, %59 : vector<1x128xf32>
    %61 = arith.mulf %55, %55 : vector<1x128xf32>
    %62 = arith.subf %60, %61 : vector<1x128xf32>
    %cst_30 = arith.constant 0.000000e+00 : f32
    %63 = vector.broadcast %cst_30 : f32 to vector<1x128xf32>
    %64 = arith.maximumf %62, %63 : vector<1x128xf32>
    %cst_31 = arith.constant 9.99999974E-6 : f32
    %65 = vector.broadcast %cst_31 : f32 to vector<1x128xf32>
    %66 = arith.addf %64, %65 : vector<1x128xf32>
    %67 = math.rsqrt %66 : vector<1x128xf32>
    %68 = arith.truncf %55 : vector<1x128xf32> to vector<1x128xbf16>
    %69 = vector.broadcast %68 : vector<1x128xbf16> to vector<128x128xbf16>
    %70 = arith.subf %50, %69 : vector<128x128xbf16>
    %71 = arith.truncf %67 : vector<1x128xf32> to vector<1x128xbf16>
    %72 = vector.broadcast %71 : vector<1x128xbf16> to vector<128x128xbf16>
    %73 = arith.mulf %70, %72 : vector<128x128xbf16>
    %74 = arith.truncf %46 : vector<128x1xf32> to vector<128x1xbf16>
    %75 = vector.broadcast %74 : vector<128x1xbf16> to vector<128x128xbf16>
    %76 = arith.mulf %73, %75 : vector<128x128xbf16>
    %77 = arith.truncf %47 : vector<128x1xf32> to vector<128x1xbf16>
    %78 = vector.broadcast %77 : vector<128x1xbf16> to vector<128x128xbf16>
    %79 = arith.addf %76, %78 : vector<128x128xbf16>
    %c0_32 = arith.constant 0 : index
    %c0_33 = arith.constant 0 : index
    %80 = vector.load %arg10[%c0_32, %c0_33] : memref<4x128xbf16, #tpu.memory_space<vmem>>, vector<4x128xbf16>
    %cst_34 = arith.constant dense<0.000000e+00> : vector<4x128xf32>
    %81 = tpu.matmul %80, %79, %cst_34 {dimension_numbers = #tpu.dot_dimension_numbers<[1], [0], [0], [1], [0, 0, 1, 1], [], []>} : vector<4x128xbf16>, vector<128x128xbf16>, vector<4x128xf32> -> vector<4x128xf32>
    %c0_35 = arith.constant 0 : index
    %c0_36 = arith.constant 0 : index
    %82 = vector.load %arg11[%c0_35, %c0_36] : memref<4x1xf32, #tpu.memory_space<vmem>>, vector<4x1xf32>
    %83 = vector.broadcast %82 : vector<4x1xf32> to vector<4x128xf32>
    %84 = arith.addf %81, %83 : vector<4x128xf32>
    %85 = vector.extract_strided_slice %84 {offsets = [0, 0], sizes = [2, 128], strides = [1, 1]} : vector<4x128xf32> to vector<2x128xf32>
    %86 = vector.extract_strided_slice %84 {offsets = [2, 0], sizes = [2, 128], strides = [1, 1]} : vector<4x128xf32> to vector<2x128xf32>
    %cst_37 = arith.constant 2.000000e+01 : f32
    %87 = vector.broadcast %cst_37 : f32 to vector<2x128xf32>
    %88 = arith.cmpf ogt, %86, %87 : vector<2x128xf32>
    %cst_38 = arith.constant 2.000000e+01 : f32
    %89 = vector.broadcast %cst_38 : f32 to vector<2x128xf32>
    %90 = arith.minimumf %86, %89 : vector<2x128xf32>
    %91 = math.exp %90 : vector<2x128xf32>
    %92 = math.log1p %91 : vector<2x128xf32>
    %93 = arith.select %88, %86, %92 : vector<2x128xi1>, vector<2x128xf32>
    %c0_39 = arith.constant 0 : index
    %c0_40 = arith.constant 0 : index
    %94 = vector.load %arg12[%c0_39, %c0_40] : memref<2x128xf32, #tpu.memory_space<vmem>>, vector<2x128xf32>
    %95 = arith.mulf %93, %94 : vector<2x128xf32>
    %96 = arith.addf %85, %95 : vector<2x128xf32>
    %cst_41 = arith.constant -5.000000e-01 : f32
    %97 = vector.broadcast %cst_41 : f32 to vector<2x128xf32>
    %98 = arith.mulf %97, %94 : vector<2x128xf32>
    %99 = arith.mulf %98, %94 : vector<2x128xf32>
    %100 = math.log %93 : vector<2x128xf32>
    %101 = arith.subf %99, %100 : vector<2x128xf32>
    %cst_42 = arith.constant 0.918938517 : f32
    %102 = vector.broadcast %cst_42 : f32 to vector<2x128xf32>
    %103 = arith.subf %101, %102 : vector<2x128xf32>
    %104 = math.tanh %96 : vector<2x128xf32>
    %105 = arith.mulf %104, %104 : vector<2x128xf32>
    %cst_43 = arith.constant 1.000000e+00 : f32
    %106 = vector.broadcast %cst_43 : f32 to vector<2x128xf32>
    %107 = arith.subf %106, %105 : vector<2x128xf32>
    %cst_44 = arith.constant 1.000000e-07 : f32
    %108 = vector.broadcast %cst_44 : f32 to vector<2x128xf32>
    %109 = arith.addf %107, %108 : vector<2x128xf32>
    %110 = math.log %109 : vector<2x128xf32>
    %111 = arith.subf %103, %110 : vector<2x128xf32>
    %c0_45 = arith.constant 0 : index
    %c0_46 = arith.constant 0 : index
    %112 = vector.load %arg13[%c0_45, %c0_46] : memref<4x128xf32, #tpu.memory_space<vmem>>, vector<2x128xf32>
    tpu.vector_store %arg13[%c0_45, %c0_46], %104 {strides = array<i32>} : memref<4x128xf32, #tpu.memory_space<vmem>>, vector<2x128xf32>,
    %c2 = arith.constant 2 : index
    %c0_47 = arith.constant 0 : index
    %113 = vector.load %arg13[%c2, %c0_47] : memref<4x128xf32, #tpu.memory_space<vmem>>, vector<2x128xf32>
    tpu.vector_store %arg13[%c2, %c0_47], %111 {strides = array<i32>} : memref<4x128xf32, #tpu.memory_space<vmem>>, vector<2x128xf32>,
    return
  }
  func.func @transform_0(%arg0: i32) -> (i32, i32) {
    %c0_i32 = arith.constant 0 : i32
    %c0_i32_0 = arith.constant 0 : i32
    return %arg0, %c0_i32 : i32, i32
  }
  func.func @transform_1(%arg0: i32) -> (i32, i32) {
    %c0_i32 = arith.constant 0 : i32
    %c0_i32_0 = arith.constant 0 : i32
    %c0_i32_1 = arith.constant 0 : i32
    return %c0_i32, %c0_i32_0 : i32, i32
  }
  func.func @transform_2(%arg0: i32) -> (i32, i32) {
    %c0_i32 = arith.constant 0 : i32
    %c0_i32_0 = arith.constant 0 : i32
    %c0_i32_1 = arith.constant 0 : i32
    return %c0_i32, %c0_i32_0 : i32, i32
  }
  func.func @transform_3(%arg0: i32) -> (i32, i32) {
    %c0_i32 = arith.constant 0 : i32
    %c0_i32_0 = arith.constant 0 : i32
    %c0_i32_1 = arith.constant 0 : i32
    return %c0_i32, %c0_i32_0 : i32, i32
  }
  func.func @transform_4(%arg0: i32) -> (i32, i32) {
    %c0_i32 = arith.constant 0 : i32
    %c0_i32_0 = arith.constant 0 : i32
    %c0_i32_1 = arith.constant 0 : i32
    return %c0_i32, %c0_i32_0 : i32, i32
  }
  func.func @transform_5(%arg0: i32) -> (i32, i32) {
    %c0_i32 = arith.constant 0 : i32
    %c0_i32_0 = arith.constant 0 : i32
    %c0_i32_1 = arith.constant 0 : i32
    return %c0_i32, %c0_i32_0 : i32, i32
  }
  func.func @transform_6(%arg0: i32) -> (i32, i32) {
    %c0_i32 = arith.constant 0 : i32
    %c0_i32_0 = arith.constant 0 : i32
    %c0_i32_1 = arith.constant 0 : i32
    return %c0_i32, %c0_i32_0 : i32, i32
  }
  func.func @transform_7(%arg0: i32) -> (i32, i32) {
    %c0_i32 = arith.constant 0 : i32
    %c0_i32_0 = arith.constant 0 : i32
    %c0_i32_1 = arith.constant 0 : i32
    return %c0_i32, %c0_i32_0 : i32, i32
  }
  func.func @transform_8(%arg0: i32) -> (i32, i32) {
    %c0_i32 = arith.constant 0 : i32
    %c0_i32_0 = arith.constant 0 : i32
    %c0_i32_1 = arith.constant 0 : i32
    return %c0_i32, %c0_i32_0 : i32, i32
  }
  func.func @transform_9(%arg0: i32) -> (i32, i32) {
    %c0_i32 = arith.constant 0 : i32
    %c0_i32_0 = arith.constant 0 : i32
    %c0_i32_1 = arith.constant 0 : i32
    return %c0_i32, %c0_i32_0 : i32, i32
  }
  func.func @transform_10(%arg0: i32) -> (i32, i32) {
    %c0_i32 = arith.constant 0 : i32
    %c0_i32_0 = arith.constant 0 : i32
    %c0_i32_1 = arith.constant 0 : i32
    return %c0_i32, %c0_i32_0 : i32, i32
  }
  func.func @transform_11(%arg0: i32) -> (i32, i32) {
    %c0_i32 = arith.constant 0 : i32
    %c0_i32_0 = arith.constant 0 : i32
    return %c0_i32, %arg0 : i32, i32
  }
  func.func @transform_12(%arg0: i32) -> (i32, i32) {
    %c0_i32 = arith.constant 0 : i32
    %c0_i32_0 = arith.constant 0 : i32
    return %c0_i32, %arg0 : i32, i32
  }
}

</mosaic_0001>

<bundles_post_ra>
// kernel: tpu_custom_call.1
= control target key start
LH: loop header
LB: loop body
LE: loop exit
PB: predicated region body
PF: predicated region fallthrough
CT: control target
= control target key end

     0   :  { %vm219_vm0 = vcmask 80896   ;;  %v1461_v5 = vmov 0   ;;  %s2061_s0 = inlined_call_operand.vmem [shape: f32[128,10], index: 0, kind: input, shape index: {}]   ;;  %s2062_s1 = inlined_call_operand.vmem [shape: bf16[128,10], index: 1, kind: input, shape index: {}]   ;;  %s2063_s2 = inlined_call_operand.vmem [shape: f32[128,1], index: 2, kind: input, shape index: {}]   ;;  %s2064_s3 = inlined_call_operand.vmem [shape: f32[128,1], index: 3, kind: input, shape index: {}]   ;;  %s2065_s4 = inlined_call_operand.vmem [shape: f32[128,1], index: 4, kind: input, shape index: {}]   ;;  %s2066_s5 = inlined_call_operand.vmem [shape: bf16[128,128], index: 5, kind: input, shape index: {}]   ;;  %s2067_s6 = inlined_call_operand.vmem [shape: f32[128,1], index: 6, kind: input, shape index: {}]   ;;  %s2068_s7 = inlined_call_operand.vmem [shape: f32[128,1], index: 7, kind: input, shape index: {}]   ;;  %s2069_s8 = inlined_call_operand.vmem [shape: f32[128,1], index: 8, kind: input, shape index: {}]   ;;  %s2070_s9 = inlined_call_operand.vmem [shape: bf16[4,128], index: 9, kind: input, shape index: {}]   ;;  %s2071_s10 = inlined_call_operand.vmem [shape: f32[4,1], index: 10, kind: input, shape index: {}]   ;;  %s2072_s11 = inlined_call_operand.vmem [shape: f32[2,128], index: 11, kind: input, shape index: {}]   ;;  %s2073_s12 = inlined_call_operand.hbm [shape: f32[4,128], index: 12, kind: output, shape index: {}]  }
   0x1   :  { %v43_v0 = vld [vmem:[%s2061_s0] sm:$0xff]  ;;  %v44_v1 = vld [vmem:[%s2061_s0 + $0x8] sm:$0xff]  ;;  %v45_v2 = vld [vmem:[%s2061_s0 + $0x10] sm:$0xff]  ;;  %1405 = vset.pattern.permute.xlu0 %v1461_v5  ;;  %1406 = vset.pattern.permute.xlu1 %v1461_v5 }
   0x2   :  { %v59_v3 = vpack.c.bf16 %v44_v1, %v43_v0  ;;  %v46_v4 = vld [vmem:[%s2061_s0 + $0x18] sm:$0xff]  ;;  %v83_v7 = vld [vmem:[%s2063_s2] sm:$0xff]  ;;  %v85_v9 = vld [vmem:[%s2063_s2 + $0x10] sm:$0xff] }
   0x3   :  { %v60_v6 = vpack.c.bf16 %v46_v4, %v45_v2  ;;  %101 = vperm.xlu0 %1405, %v83_v7   ;;  %v84_v10 = vld [vmem:[%s2063_s2 + $0x8] sm:$0xff]  ;;  %111 = vperm.xlu1 %1406, %v85_v9   ;;  %v86_v11 = vld [vmem:[%s2063_s2 + $0x18] sm:$0xff]  ;;  %v47_v12 = vld [vmem:[%s2061_s0 + $0x20] sm:$0xff] }
   0x4   :  { %1393 = vmatprep.subr.msk.bf16.mxu0 %vm219_vm0, %v59_v3  ;;  %v245_v8 = vsel %vm219_vm0, %v59_v3, 0  ;;  %v48_v13 = vld [vmem:[%s2061_s0 + $0x28] sm:$0xff]  ;;  %v87_v14 = vld [vmem:[%s2063_s2 + $0x20] sm:$0xff]  ;;  %v89_v18 = vld [vmem:[%s2063_s2 + $0x30] sm:$0xff] }
   0x5   :  { %1310 = vmatpush3.bf16.xpose.msra.mxu0 %v245_v8  ;;  %v248_v15 = vsel %vm219_vm0, %v60_v6, 0  ;;  %v61_v16 = vpack.c.bf16 %v48_v13, %v47_v12  ;;  %v88_v17 = vld [vmem:[%s2063_s2 + $0x28] sm:$0xff]  ;;  %v49_v19 = vld [vmem:[%s2061_s0 + $0x30] sm:$0xff]  ;;  %v50_v20 = vld [vmem:[%s2061_s0 + $0x38] sm:$0xff] }
   0x6   :  { %1394 = vmatprep.subr.msk.bf16.mxu0 %vm219_vm0, %v60_v6  ;;  %v90_v21 = vld [vmem:[%s2063_s2 + $0x38] sm:$0xff]  ;;  %v1407_v22 = vld [vmem:[%s2062_s1] sm:$0xff]   ;;  %v62_v25 = vpack.c.bf16 %v50_v20, %v49_v19  ;;  %v92_v26 = vld [vmem:[%s2063_s2 + $0x48] sm:$0xff] }
   0x7   :  { %106 = vperm.xlu0 %1405, %v84_v10   ;;  %116 = vperm.xlu1 %1406, %v86_v11   ;;  %v91_v23 = vld [vmem:[%s2063_s2 + $0x40] sm:$0xff]  ;;  %v251_v24 = vsel %vm219_vm0, %v61_v16, 0  ;;  %v93_v27 = vld [vmem:[%s2063_s2 + $0x50] sm:$0xff]  ;;  %v94_v28 = vld [vmem:[%s2063_s2 + $0x58] sm:$0xff] }
   0x8   :  { %1325 = vmatprep.mubr.msk.bf16.mxu0 %vm219_vm0, %v1407_v22  ;;  %v51_v29 = vld [vmem:[%s2061_s0 + $0x40] sm:$0xff]  ;;  %v52_v30 = vld [vmem:[%s2061_s0 + $0x48] sm:$0xff]  ;;  %v254_v32 = vsel %vm219_vm0, %v62_v25, 0  ;;  %v97_v35 = vld [vmem:[%s2063_s2 + $0x70] sm:$0xff] }
   0x9   :  { %v95_v31 = vld [vmem:[%s2063_s2 + $0x60] sm:$0xff]  ;;  %v63_v33 = vpack.c.bf16 %v52_v30, %v51_v29  ;;  %v96_v34 = vld [vmem:[%s2063_s2 + $0x68] sm:$0xff]  ;;  %v98_v38 = vld [vmem:[%s2063_s2 + $0x78] sm:$0xff] }
   0xa   :  { %v365_v36 = vld [vmem:[%s2064_s3] sm:$0xff]  ;;  %v366_v37 = vld [vmem:[%s2064_s3 + $0x8] sm:$0xff]  ;;  %v53_v41 = vld [vmem:[%s2061_s0 + $0x50] sm:$0xff] }
   0xb   :  { %121 = vperm.xlu0 %1405, %v87_v14   ;;  %126 = vperm.xlu1 %1406, %v88_v17   ;;  %v381_v39 = vld [vmem:[%s2065_s4] sm:$0xff]  ;;  %v382_v40 = vld [vmem:[%s2065_s4 + $0x8] sm:$0xff]  ;;  %v54_v42 = vld [vmem:[%s2061_s0 + $0x58] sm:$0xff]  ;;  %v513_v43 = vpack.c.bf16 %v366_v37, %v365_v36  ;;  %v257_v47 = vsel %vm219_vm0, %v63_v33, 0 }
   0xc   :  { %v367_v44 = vld [vmem:[%s2064_s3 + $0x10] sm:$0xff]  ;;  %v368_v45 = vld [vmem:[%s2064_s3 + $0x18] sm:$0xff]  ;;  %v569_v46 = vpack.c.bf16 %v382_v40, %v381_v39  ;;  %v64_v48 = vpack.c.bf16 %v54_v42, %v53_v41  ;;  %v369_v52 = vld [vmem:[%s2064_s3 + $0x20] sm:$0xff] }
   0xd   :  { %1312 = vmatpush3.bf16.xpose.msra.mxu0 %v248_v15  ;;  %v383_v49 = vld [vmem:[%s2065_s4 + $0x10] sm:$0xff]  ;;  %v384_v50 = vld [vmem:[%s2065_s4 + $0x18] sm:$0xff]  ;;  %v514_v51 = vpack.c.bf16 %v368_v45, %v367_v44  ;;  %v370_v53 = vld [vmem:[%s2064_s3 + $0x28] sm:$0xff] }
   0xe   :  { %1395 = vmatprep.subr.msk.bf16.mxu0 %vm219_vm0, %v61_v16  ;;  %v570_v54 = vpack.c.bf16 %v384_v50, %v383_v49  ;;  %v385_v55 = vld [vmem:[%s2065_s4 + $0x20] sm:$0xff]  ;;  %v386_v56 = vld [vmem:[%s2065_s4 + $0x28] sm:$0xff]  ;;  %v515_v59 = vpack.c.bf16 %v370_v53, %v369_v52  ;;  %v371_v60 = vld [vmem:[%s2064_s3 + $0x30] sm:$0xff]  ;;  %v260_v63 = vsel %vm219_vm0, %v64_v48, 0 }
   0xf   :  { %131 = vperm.xlu0 %1405, %v89_v18   ;;  %136 = vperm.xlu1 %1406, %v90_v21   ;;  %v55_v57 = vld [vmem:[%s2061_s0 + $0x60] sm:$0xff]  ;;  %v56_v58 = vld [vmem:[%s2061_s0 + $0x68] sm:$0xff]  ;;  %v372_v61 = vld [vmem:[%s2064_s3 + $0x38] sm:$0xff]  ;;  %v571_v62 = vpack.c.bf16 %v386_v56, %v385_v55 }
  0x10   :  { %v65_v0 = vpack.c.bf16 %v56_v58, %v55_v57  ;;  %v387_v1 = vld [vmem:[%s2065_s4 + $0x30] sm:$0xff]  ;;  %v388_v2 = vld [vmem:[%s2065_s4 + $0x38] sm:$0xff]  ;;  %v516_v3 = vpack.c.bf16 %v372_v61, %v371_v60  ;;  %v373_v7 = vld [vmem:[%s2064_s3 + $0x40] sm:$0xff] }
  0x11   :  { %v57_v4 = vld [vmem:[%s2061_s0 + $0x70] sm:$0xff]  ;;  %v58_v6 = vld [vmem:[%s2061_s0 + $0x78] sm:$0xff]  ;;  %v374_v8 = vld [vmem:[%s2064_s3 + $0x48] sm:$0xff]  ;;  %v572_v9 = vpack.c.bf16 %v388_v2, %v387_v1 }
  0x12   :  { %v263_v10 = vsel %vm219_vm0, %v65_v0, 0  ;;  %v389_v11 = vld [vmem:[%s2065_s4 + $0x40] sm:$0xff]  ;;  %v390_v12 = vld [vmem:[%s2065_s4 + $0x48] sm:$0xff]  ;;  %v375_v13 = vld [vmem:[%s2064_s3 + $0x50] sm:$0xff]  ;;  %v517_v15 = vpack.c.bf16 %v374_v8, %v373_v7  ;;  %v66_v19 = vpack.c.bf16 %v58_v6, %v57_v4 }
  0x13   :  { %141 = vperm.xlu0 %1405, %v91_v23   ;;  %146 = vperm.xlu1 %1406, %v92_v26   ;;  %v376_v14 = vld [vmem:[%s2064_s3 + $0x58] sm:$0xff]  ;;  %v391_v16 = vld [vmem:[%s2065_s4 + $0x50] sm:$0xff]  ;;  %v573_v18 = vpack.c.bf16 %v390_v12, %v389_v11 }
  0x14   :  { %v392_v17 = vld [vmem:[%s2065_s4 + $0x58] sm:$0xff]  ;;  %v518_v20 = vpack.c.bf16 %v376_v14, %v375_v13 }
  0x15   :  { %1314 = vmatpush3.bf16.xpose.msra.mxu0 %v251_v24 }
  0x16   :  { %1396 = vmatprep.subr.msk.bf16.mxu0 %vm219_vm0, %v62_v25 }
  0x17   :  { %151 = vperm.xlu0 %1405, %v93_v27   ;;  %156 = vperm.xlu1 %1406, %v94_v28  }
  0x1b   :  { %161 = vperm.xlu0 %1405, %v95_v31   ;;  %166 = vperm.xlu1 %1406, %v96_v34  }
  0x1d   :  { %1316 = vmatpush3.bf16.xpose.msra.mxu0 %v254_v32 }
  0x1e   :  { %1397 = vmatprep.subr.msk.bf16.mxu0 %vm219_vm0, %v63_v33 }
  0x1f   :  { %171 = vperm.xlu0 %1405, %v97_v35   ;;  %176 = vperm.xlu1 %1406, %v98_v38  }
  0x23   :  { %523 = vperm.xlu0 %1405, %v513_v43   ;;  %579 = vperm.xlu1 %1406, %v569_v46  }
  0x25   :  { %1318 = vmatpush3.bf16.xpose.msra.mxu0 %v257_v47 }
  0x26   :  { %1398 = vmatprep.subr.msk.bf16.mxu0 %vm219_vm0, %v64_v48 }
  0x27   :  { %528 = vperm.xlu0 %1405, %v514_v51   ;;  %584 = vperm.xlu1 %1406, %v570_v54  }
  0x2b   :  { %533 = vperm.xlu0 %1405, %v515_v59   ;;  %589 = vperm.xlu1 %1406, %v571_v62  }
  0x2d   :  { %1320 = vmatpush3.bf16.xpose.msra.mxu0 %v260_v63 }
  0x2e   :  { %1399 = vmatprep.subr.msk.bf16.mxu0 %vm219_vm0, %v65_v0 }
  0x2f   :  { %538 = vperm.xlu0 %1405, %v516_v3   ;;  %594 = vperm.xlu1 %1406, %v572_v9  }
  0x33   :  { %543 = vperm.xlu0 %1405, %v517_v15  }
  0x34   :  { %17 = vsyncpa [#allocation3], 0  ;;  %599 = vperm.xlu1 %1406, %v573_v18   ;;  %v377_v21 = vld [vmem:[%s2064_s3 + $0x60] sm:$0xff]  ;;  %v378_v22 = vld [vmem:[%s2064_s3 + $0x68] sm:$0xff]  ;;  %v574_v23 = vpack.c.bf16 %v392_v17, %v391_v16  ;;  %v266_v30 = vsel %vm219_vm0, %v66_v19, 0  ;;  %vm1463_vm1 = vmmov 0  }
  0x35   :  { %1322 = vmatpush3.bf16.xpose.msra.mxu0 %v263_v10  ;;  %v393_v24 = vld [vmem:[%s2065_s4 + $0x60] sm:$0xff]  ;;  %v394_v25 = vld [vmem:[%s2065_s4 + $0x68] sm:$0xff]  ;;  %v519_v26 = vpack.c.bf16 %v378_v22, %v377_v21  ;;  %v379_v27 = vld [vmem:[%s2064_s3 + $0x70] sm:$0xff] }
  0x36   :  { %1400 = vmatprep.subr.msk.bf16.mxu0 %vm219_vm0, %v66_v19  ;;  %v380_v28 = vld [vmem:[%s2064_s3 + $0x78] sm:$0xff]  ;;  %v575_v29 = vpack.c.bf16 %v394_v25, %v393_v24  ;;  %v395_v31 = vld [vmem:[%s2065_s4 + $0x70] sm:$0xff]  ;;  %v1408_v35 = vld [vmem:[%s2062_s1 + $0x8] sm:$0xff]  }
  0x37   :  { %548 = vperm.xlu0 %1405, %v518_v20   ;;  %v396_v32 = vld [vmem:[%s2065_s4 + $0x78] sm:$0xff]  ;;  %v520_v33 = vpack.c.bf16 %v380_v28, %v379_v27  ;;  %v1409_v36 = vld [vmem:[%s2062_s1 + $0x10] sm:$0xff]   ;;  %v641_v37 = vld [vmem:[%s2067_s6] sm:$0xff] }
  0x38   :  { %604 = vperm.xlu1 %1406, %v574_v23   ;;  %v576_v34 = vpack.c.bf16 %v396_v32, %v395_v31  ;;  %v642_v38 = vld [vmem:[%s2067_s6 + $0x8] sm:$0xff]  ;;  %v643_v39 = vld [vmem:[%s2067_s6 + $0x10] sm:$0xff]  ;;  %v644_v40 = vld [vmem:[%s2067_s6 + $0x18] sm:$0xff] }
  0x39   :  { %v1410_v41 = vld [vmem:[%s2062_s1 + $0x18] sm:$0xff]   ;;  %v1411_v42 = vld [vmem:[%s2062_s1 + $0x20] sm:$0xff]   ;;  %v646_v44 = vld [vmem:[%s2067_s6 + $0x28] sm:$0xff] }
  0x3a   :  { %v645_v43 = vld [vmem:[%s2067_s6 + $0x20] sm:$0xff]  ;;  %v647_v45 = vld [vmem:[%s2067_s6 + $0x30] sm:$0xff]  ;;  %v648_v46 = vld [vmem:[%s2067_s6 + $0x38] sm:$0xff] }
  0x3b   :  { %553 = vperm.xlu0 %1405, %v519_v26   ;;  %v1412_v47 = vld [vmem:[%s2062_s1 + $0x28] sm:$0xff]   ;;  %v1413_v48 = vld [vmem:[%s2062_s1 + $0x30] sm:$0xff]   ;;  %v649_v49 = vld [vmem:[%s2067_s6 + $0x40] sm:$0xff] }
  0x3c   :  { %609 = vperm.xlu1 %1406, %v575_v29   ;;  %v650_v50 = vld [vmem:[%s2067_s6 + $0x48] sm:$0xff]  ;;  %v651_v51 = vld [vmem:[%s2067_s6 + $0x50] sm:$0xff]  ;;  %v652_v52 = vld [vmem:[%s2067_s6 + $0x58] sm:$0xff] }
  0x3d   :  { %1324 = vmatpush3.bf16.xpose.msra.mxu0 %v266_v30  ;;  %v1414_v53 = vld [vmem:[%s2062_s1 + $0x38] sm:$0xff]   ;;  %v653_v54 = vld [vmem:[%s2067_s6 + $0x60] sm:$0xff]  ;;  %v654_v55 = vld [vmem:[%s2067_s6 + $0x68] sm:$0xff] }
  0x3e   :  { %v655_v56 = vld [vmem:[%s2067_s6 + $0x70] sm:$0xff]  ;;  %v882_v57 = vld [vmem:[%s2068_s7] sm:$0xff]  ;;  %v883_v58 = vld [vmem:[%s2068_s7 + $0x8] sm:$0xff] }
  0x3f   :  { %558 = vperm.xlu0 %1405, %v520_v33   ;;  %v656_v59 = vld [vmem:[%s2067_s6 + $0x78] sm:$0xff]  ;;  %v898_v60 = vld [vmem:[%s2069_s8] sm:$0xff]  ;;  %v899_v61 = vld [vmem:[%s2069_s8 + $0x8] sm:$0xff]  ;;  %v1029_v62 = vpack.c.bf16 %v883_v58, %v882_v57 }
  0x40   :  { %614 = vperm.xlu1 %1406, %v576_v34   ;;  %v884_v63 = vld [vmem:[%s2068_s7 + $0x10] sm:$0xff]  ;;  %v885_v0 = vld [vmem:[%s2068_s7 + $0x18] sm:$0xff]  ;;  %v1085_v1 = vpack.c.bf16 %v899_v61, %v898_v60  ;;  %v886_v6 = vld [vmem:[%s2068_s7 + $0x20] sm:$0xff] }
  0x41   :  { %v900_v2 = vld [vmem:[%s2069_s8 + $0x10] sm:$0xff]  ;;  %v901_v3 = vld [vmem:[%s2069_s8 + $0x18] sm:$0xff]  ;;  %v1030_v4 = vpack.c.bf16 %v885_v0, %v884_v63  ;;  %v887_v7 = vld [vmem:[%s2068_s7 + $0x28] sm:$0xff] }
  0x42   :  { %v1086_v8 = vpack.c.bf16 %v901_v3, %v900_v2  ;;  %v902_v9 = vld [vmem:[%s2069_s8 + $0x20] sm:$0xff]  ;;  %v903_v10 = vld [vmem:[%s2069_s8 + $0x28] sm:$0xff]  ;;  %v1031_v11 = vpack.c.bf16 %v887_v7, %v886_v6  ;;  %v888_v12 = vld [vmem:[%s2068_s7 + $0x30] sm:$0xff] }
  0x43   :  { %659 = vperm.xlu0 %1405, %v641_v37   ;;  %v889_v13 = vld [vmem:[%s2068_s7 + $0x38] sm:$0xff]  ;;  %v1087_v14 = vpack.c.bf16 %v903_v10, %v902_v9  ;;  %v904_v15 = vld [vmem:[%s2069_s8 + $0x30] sm:$0xff]  ;;  %v890_v18 = vld [vmem:[%s2068_s7 + $0x40] sm:$0xff] }
  0x44   :  { %1326 = vmatmul.mubr.msk.bf16.vlgmr.msra.gmra.mrb[0].mxu0 %vm219_vm0, %v1408_v35  ;;  %664 = vperm.xlu1 %1406, %v642_v38   ;;  %v905_v16 = vld [vmem:[%s2069_s8 + $0x38] sm:$0xff]  ;;  %v1032_v17 = vpack.c.bf16 %v889_v13, %v888_v12  ;;  %v891_v19 = vld [vmem:[%s2068_s7 + $0x48] sm:$0xff]  ;;  %v906_v21 = vld [vmem:[%s2069_s8 + $0x40] sm:$0xff] }
  0x45   :  { %1329 = vmatprep.mubr.msk.bf16.mxu0 %vm219_vm0, %v1409_v36  ;;  %v1088_v20 = vpack.c.bf16 %v905_v16, %v904_v15  ;;  %v907_v22 = vld [vmem:[%s2069_s8 + $0x48] sm:$0xff]  ;;  %v1033_v23 = vpack.c.bf16 %v891_v19, %v890_v18  ;;  %v892_v24 = vld [vmem:[%s2068_s7 + $0x50] sm:$0xff]  ;;  %v893_v25 = vld [vmem:[%s2068_s7 + $0x58] sm:$0xff] }
  0x46   :  { %v1089_v26 = vpack.c.bf16 %v907_v22, %v906_v21  ;;  %v908_v27 = vld [vmem:[%s2069_s8 + $0x50] sm:$0xff]  ;;  %v909_v28 = vld [vmem:[%s2069_s8 + $0x58] sm:$0xff]  ;;  %v1034_v29 = vpack.c.bf16 %v893_v25, %v892_v24  ;;  %v894_v30 = vld [vmem:[%s2068_s7 + $0x60] sm:$0xff] }
  0x47   :  { %669 = vperm.xlu0 %1405, %v643_v39   ;;  %v895_v31 = vld [vmem:[%s2068_s7 + $0x68] sm:$0xff]  ;;  %v1090_v32 = vpack.c.bf16 %v909_v28, %v908_v27  ;;  %v910_v33 = vld [vmem:[%s2069_s8 + $0x60] sm:$0xff]  ;;  %v896_v36 = vld [vmem:[%s2068_s7 + $0x70] sm:$0xff] }
  0x48   :  { %674 = vperm.xlu1 %1406, %v644_v40   ;;  %v911_v34 = vld [vmem:[%s2069_s8 + $0x68] sm:$0xff]  ;;  %v1035_v35 = vpack.c.bf16 %v895_v31, %v894_v30  ;;  %v897_v37 = vld [vmem:[%s2068_s7 + $0x78] sm:$0xff]  ;;  %v912_v39 = vld [vmem:[%s2069_s8 + $0x70] sm:$0xff] }
  0x49   :  { %v1091_v38 = vpack.c.bf16 %v911_v34, %v910_v33  ;;  %v913_v40 = vld [vmem:[%s2069_s8 + $0x78] sm:$0xff] }
  0x4b   :  { %679 = vperm.xlu0 %1405, %v645_v43   ;;  %v1142_v43 = vld [vmem:[%s2071_s10] sm:$0xf] }
  0x4c   :  { %1330 = vmatmul.mubr.msk.bf16.gmra.mrb[4].mxu0 %vm219_vm0, %v1410_v41  ;;  %684 = vperm.xlu1 %1406, %v646_v44   ;;  %v1036_v41 = vpack.c.bf16 %v897_v37, %v896_v36 }
  0x4d   :  { %1333 = vmatprep.mubr.msk.bf16.mxu0 %vm219_vm0, %v1411_v42  ;;  %v1092_v42 = vpack.c.bf16 %v913_v40, %v912_v39 }
  0x4f   :  { %689 = vperm.xlu0 %1405, %v647_v45  }
  0x50   :  { %694 = vperm.xlu1 %1406, %v648_v46   ;;  %v1415_v46 = vld [vmem:[%s2066_s5] sm:$0xff]  }
  0x51   :  { %1357 = vmatprep.mubr.bf16.mxu1 %v1415_v46 }
  0x53   :  { %699 = vperm.xlu0 %1405, %v649_v49  }
  0x54   :  { %1334 = vmatmul.mubr.msk.bf16.gmra.mrb[8].mxu0 %vm219_vm0, %v1412_v47  ;;  %704 = vperm.xlu1 %1406, %v650_v50  }
  0x55   :  { %1337 = vmatprep.mubr.msk.bf16.mxu0 %vm219_vm0, %v1413_v48 }
  0x57   :  { %709 = vperm.xlu0 %1405, %v651_v51  }
  0x58   :  { %714 = vperm.xlu1 %1406, %v652_v52  }
  0x5b   :  { %719 = vperm.xlu0 %1405, %v653_v54  }
  0x5c   :  { %1338 = vmatmul.mubr.msk.bf16.gmra.mrb[12].mxu0 %vm219_vm0, %v1414_v53  ;;  %724 = vperm.xlu1 %1406, %v654_v55  }
  0x5f   :  { %729 = vperm.xlu0 %1405, %v655_v56  }
  0x60   :  { %734 = vperm.xlu1 %1406, %v656_v59  }
  0x63   :  { %1039 = vperm.xlu0 %1405, %v1029_v62  }
  0x64   :  { %1095 = vperm.xlu1 %1406, %v1085_v1  }
  0x67   :  { %1044 = vperm.xlu0 %1405, %v1030_v4  }
  0x68   :  { %1100 = vperm.xlu1 %1406, %v1086_v8  }
  0x6b   :  { %1049 = vperm.xlu0 %1405, %v1031_v11  }
  0x6c   :  { %1105 = vperm.xlu1 %1406, %v1087_v14  }
  0x6f   :  { %1054 = vperm.xlu0 %1405, %v1032_v17  }
  0x70   :  { %1110 = vperm.xlu1 %1406, %v1088_v20  }
  0x73   :  { %1059 = vperm.xlu0 %1405, %v1033_v23  }
  0x74   :  { %1115 = vperm.xlu1 %1406, %v1089_v26  }
  0x77   :  { %1064 = vperm.xlu0 %1405, %v1034_v29  }
  0x78   :  { %1120 = vperm.xlu1 %1406, %v1090_v32  }
  0x7b   :  { %1069 = vperm.xlu0 %1405, %v1035_v35  }
  0x7c   :  { %1125 = vperm.xlu1 %1406, %v1091_v38  }
  0x7f   :  { %1074 = vperm.xlu0 %1405, %v1036_v41  }
  0x80   :  { %1130 = vperm.xlu1 %1406, %v1092_v42  }
  0x82   :  { %v102_v44 = vpop.permute.xlu0 %101  ;;  %v112_v45 = vpop.permute.xlu1 %111 }
  0x83   :  { %1145 = vperm.xlu0 %1405, %v1142_v43  }
  0x86   :  { %v107_v47 = vpop.permute.xlu0 %106  ;;  %v117_v48 = vpop.permute.xlu1 %116 }
  0x8a   :  { %v122_v49 = vpop.permute.xlu0 %121  ;;  %v127_v50 = vpop.permute.xlu1 %126 }
  0x8e   :  { %v132_v52 = vpop.permute.xlu0 %131  ;;  %v137_v54 = vpop.permute.xlu1 %136 }
  0x92   :  { %v142_v63 = vpop.permute.xlu0 %141  ;;  %v147_v1 = vpop.permute.xlu1 %146 }
  0x96   :  { %v152_v19 = vpop.permute.xlu0 %151  ;;  %v157_v21 = vpop.permute.xlu1 %156 }
  0x9a   :  { %v162_v37 = vpop.permute.xlu0 %161  ;;  %v167_v42 = vpop.permute.xlu1 %166 }
 0x117   :  { %v1327_v51 = vpop.f32.mrb[0].mxu0 }
 0x118   :  { %v302_v53 = vpop.f32.mrb[1].mxu0  ;;  %v311_v56 = vadd.f32 %v1327_v51, %v112_v45 }
 0x119   :  { %v1328_v55 = vpop.f32.mrb[2].mxu0  ;;  %v303_v59 = vadd.f32 %v302_v53, %v102_v44 }
 0x11a   :  { %v314_v57 = vadd.f32 %v1328_v55, %v117_v48  ;;  %v305_v58 = vpop.f32.mrb[3].mxu0 }
 0x11b   :  { %v306_v60 = vadd.f32 %v305_v58, %v107_v47 }
 0x11c   :  { %v398_v61 = vpack.c.bf16 %v314_v57, %v311_v56 }
 0x11d   :  { %v397_v62 = vpack.c.bf16 %v306_v60, %v303_v59  ;;  %v172_v59 = vpop.permute.xlu0 %171 }
 0x11e   :  { %v1923_v0 = vmax.bf16 %v1461_v5, %v398_v61 }
 0x11f   :  { %v1926_v2 = vmax.bf16 %v1461_v5, %v397_v62  ;;  %v1331_v3 = vpop.f32.mrb[4].mxu0  ;;  %v177_v62 = vpop.permute.xlu1 %176 }
 0x120   :  { %v318_v4 = vpop.f32.mrb[5].mxu0  ;;  %v415_v6 = vunpack.c.l.bf16 %v1923_v0  ;;  %v416_v10 = vunpack.c.h.bf16 %v1923_v0  ;;  %v327_v11 = vadd.f32 %v1331_v3, %v132_v52 }
 0x121   :  { %v413_v7 = vunpack.c.l.bf16 %v1926_v2  ;;  %v414_v8 = vunpack.c.h.bf16 %v1926_v2  ;;  %v1332_v9 = vpop.f32.mrb[6].mxu0  ;;  %v319_v12 = vadd.f32 %v318_v4, %v122_v49 }
 0x122   :  { %v330_v13 = vadd.f32 %v1332_v9, %v137_v54  ;;  %v321_v14 = vpop.f32.mrb[7].mxu0  ;;  %v454_v22 = vmul.f32 %v415_v6, %v415_v6  ;;  %v455_v27 = vmul.f32 %v416_v10, %v416_v10 }
 0x123   :  { %v429_v15 = vadd.f32 %v414_v8, %v413_v7  ;;  %v452_v16 = vmul.f32 %v413_v7, %v413_v7  ;;  %v453_v17 = vmul.f32 %v414_v8, %v414_v8  ;;  %v322_v18 = vadd.f32 %v321_v14, %v127_v50 }
 0x124   :  { %v400_v20 = vpack.c.bf16 %v330_v13, %v327_v11 }
 0x125   :  { %v430_v23 = vadd.f32 %v429_v15, %v415_v6  ;;  %v468_v24 = vadd.f32 %v453_v17, %v452_v16  ;;  %v399_v25 = vpack.c.bf16 %v322_v18, %v319_v12 }
 0x126   :  { %v1933_v26 = vmax.bf16 %v1461_v5, %v400_v20 }
 0x127   :  { %v469_v28 = vadd.f32 %v468_v24, %v454_v22  ;;  %v1936_v29 = vmax.bf16 %v1461_v5, %v399_v25  ;;  %v431_v30 = vadd.f32 %v430_v23, %v416_v10  ;;  %v1335_v31 = vpop.f32.mrb[8].mxu0 }
 0x128   :  { %v334_v32 = vpop.f32.mrb[9].mxu0  ;;  %v419_v38 = vunpack.c.l.bf16 %v1933_v26  ;;  %v343_v39 = vadd.f32 %v1335_v31, %v152_v19  ;;  %v420_v47 = vunpack.c.h.bf16 %v1933_v26 }
 0x129   :  { %v417_v33 = vunpack.c.l.bf16 %v1936_v29  ;;  %v418_v34 = vunpack.c.h.bf16 %v1936_v29  ;;  %v470_v35 = vadd.f32 %v469_v28, %v455_v27  ;;  %v1336_v36 = vpop.f32.mrb[10].mxu0  ;;  %v335_v45 = vadd.f32 %v334_v32, %v142_v63 }
 0x12a   :  { %v346_v40 = vadd.f32 %v1336_v36, %v157_v21  ;;  %v337_v41 = vpop.f32.mrb[11].mxu0  ;;  %v458_v53 = vmul.f32 %v419_v38, %v419_v38  ;;  %v459_v60 = vmul.f32 %v420_v47, %v420_v47 }
 0x12b   :  { %v432_v43 = vadd.f32 %v431_v30, %v417_v33  ;;  %v456_v44 = vmul.f32 %v417_v33, %v417_v33  ;;  %v338_v46 = vadd.f32 %v337_v41, %v147_v1  ;;  %v457_v50 = vmul.f32 %v418_v34, %v418_v34 }
 0x12c   :  { %v402_v48 = vpack.c.bf16 %v346_v40, %v343_v39 }
 0x12d   :  { %v433_v49 = vadd.f32 %v432_v43, %v418_v34  ;;  %v471_v51 = vadd.f32 %v470_v35, %v456_v44  ;;  %v401_v52 = vpack.c.bf16 %v338_v46, %v335_v45 }
 0x12e   :  { %v1943_v56 = vmax.bf16 %v1461_v5, %v402_v48 }
 0x12f   :  { %v434_v54 = vadd.f32 %v433_v49, %v419_v38  ;;  %v472_v55 = vadd.f32 %v471_v51, %v457_v50  ;;  %v1946_v57 = vmax.bf16 %v1461_v5, %v401_v52  ;;  %v1339_v58 = vpop.f32.mrb[12].mxu0 }
 0x130   :  { %v350_v61 = vpop.f32.mrb[13].mxu0  ;;  %v359_v7 = vadd.f32 %v1339_v58, %v172_v59  ;;  %v423_v10 = vunpack.c.l.bf16 %v1943_v56  ;;  %v424_v17 = vunpack.c.h.bf16 %v1943_v56 }
 0x131   :  { %v473_v63 = vadd.f32 %v472_v55, %v458_v53  ;;  %v421_v1 = vunpack.c.l.bf16 %v1946_v57  ;;  %v422_v3 = vunpack.c.h.bf16 %v1946_v57  ;;  %v435_v4 = vadd.f32 %v434_v54, %v420_v47  ;;  %v1340_v6 = vpop.f32.mrb[14].mxu0 }
 0x132   :  { %v362_v8 = vadd.f32 %v1340_v6, %v177_v62  ;;  %v353_v9 = vpop.f32.mrb[15].mxu0  ;;  %v351_v14 = vadd.f32 %v350_v61, %v162_v37  ;;  %v462_v22 = vmul.f32 %v423_v10, %v423_v10  ;;  %v463_v28 = vmul.f32 %v424_v17, %v424_v17 }
 0x133   :  { %v436_v11 = vadd.f32 %v435_v4, %v421_v1  ;;  %v460_v12 = vmul.f32 %v421_v1, %v421_v1  ;;  %v474_v13 = vadd.f32 %v473_v63, %v459_v60  ;;  %v354_v16 = vadd.f32 %v353_v9, %v167_v42 }
 0x134   :  { %v404_v15 = vpack.c.bf16 %v362_v8, %v359_v7  ;;  %v461_v19 = vmul.f32 %v422_v3, %v422_v3 }
 0x135   :  { %v437_v18 = vadd.f32 %v436_v11, %v422_v3  ;;  %v475_v20 = vadd.f32 %v474_v13, %v460_v12  ;;  %v403_v21 = vpack.c.bf16 %v354_v16, %v351_v14  ;;  %v524_v14 = vpop.permute.xlu0 %523 }
 0x136   :  { %v1953_v25 = vmax.bf16 %v1461_v5, %v404_v15 }
 0x137   :  { %v438_v23 = vadd.f32 %v437_v18, %v423_v10  ;;  %v476_v24 = vadd.f32 %v475_v20, %v461_v19  ;;  %v1956_v27 = vmax.bf16 %v1461_v5, %v403_v21  ;;  %v580_v18 = vpop.permute.xlu1 %579 }
 0x138   :  { %v427_v35 = vunpack.c.l.bf16 %v1953_v25  ;;  %v428_v38 = vunpack.c.h.bf16 %v1953_v25 }
 0x139   :  { %v477_v30 = vadd.f32 %v476_v24, %v462_v22  ;;  %v439_v31 = vadd.f32 %v438_v23, %v424_v17  ;;  %v425_v32 = vunpack.c.l.bf16 %v1956_v27  ;;  %v426_v33 = vunpack.c.h.bf16 %v1956_v27  ;;  %v529_v19 = vpop.permute.xlu0 %528 }
 0x13a   :  { %v466_v42 = vmul.f32 %v427_v35, %v427_v35  ;;  %v467_v45 = vmul.f32 %v428_v38, %v428_v38 }
 0x13b   :  { %v478_v34 = vadd.f32 %v477_v30, %v463_v28  ;;  %v440_v36 = vadd.f32 %v439_v31, %v425_v32  ;;  %v464_v37 = vmul.f32 %v425_v32, %v425_v32  ;;  %v465_v40 = vmul.f32 %v426_v33, %v426_v33  ;;  %v585_v20 = vpop.permute.xlu1 %584 }
 0x13d   :  { %v441_v39 = vadd.f32 %v440_v36, %v426_v33  ;;  %v479_v41 = vadd.f32 %v478_v34, %v464_v37 }
 0x13f   :  { %v442_v43 = vadd.f32 %v441_v39, %v427_v35  ;;  %v480_v44 = vadd.f32 %v479_v41, %v465_v40  ;;  %v590_v22 = vpop.permute.xlu1 %589 }
 0x141   :  { %v443_v46 = vadd.f32 %v442_v43, %v428_v38  ;;  %v481_v47 = vadd.f32 %v480_v44, %v466_v42 }
 0x143   :  { %v444_v48 = vrot.slane %v443_v46, 4  ;;  %v482_v49 = vadd.f32 %v481_v47, %v467_v45  ;;  %v595_v33 = vpop.permute.xlu1 %594 }
 0x145   :  { %v445_v50 = vadd.f32 %v444_v48, %v443_v46  ;;  %v483_v51 = vrot.slane %v482_v49, 4 }
 0x147   :  { %v446_v52 = vrot.slane %v445_v50, 2  ;;  %v484_v53 = vadd.f32 %v483_v51, %v482_v49  ;;  %v600_v39 = vpop.permute.xlu1 %599 }
 0x149   :  { %v447_v54 = vadd.f32 %v446_v52, %v445_v50  ;;  %v485_v55 = vrot.slane %v484_v53, 2 }
 0x14b   :  { %v448_v58 = vrot.slane %v447_v54, 1  ;;  %v486_v59 = vadd.f32 %v485_v55, %v484_v53  ;;  %v605_v43 = vpop.permute.xlu1 %604  ;;  %v1416_v55 = vld [vmem:[%s2066_s5 + $0x8] sm:$0xff]  }
 0x14d   :  { %v449_v60 = vadd.f32 %v448_v58, %v447_v54  ;;  %v487_v61 = vrot.slane %v486_v59, 1  ;;  %v1417_v58 = vld [vmem:[%s2066_s5 + $0x10] sm:$0xff]  }
 0x14f   :  { %v451_v62 = vmul.f32 0.0078125, %v449_v60  ;;  %v488_v63 = vadd.f32 %v487_v61, %v486_v59  ;;  %v610_v49 = vpop.permute.xlu1 %609  ;;  %v1418_v59 = vld [vmem:[%s2066_s5 + $0x18] sm:$0xff]   ;;  %v1419_v60 = vld [vmem:[%s2066_s5 + $0x20] sm:$0xff]   ;;  %v1420_v61 = vld [vmem:[%s2066_s5 + $0x28] sm:$0xff]  }
 0x151   :  { %v489_v1 = vmul.f32 0.0078125, %v488_v63  ;;  %v490_v3 = vmul.f32 %v451_v62, %v451_v62  ;;  %v495_v4 = vpack.c.bf16 %v451_v62, %v451_v62  ;;  %v1421_v62 = vld [vmem:[%s2066_s5 + $0x30] sm:$0xff]   ;;  %v1422_v63 = vld [vmem:[%s2066_s5 + $0x38] sm:$0xff]  }
 0x153   :  { %v491_v6 = vsub.f32 %v489_v1, %v490_v3  ;;  %v502_v7 = vsub.bf16 %v1956_v27, %v495_v4  ;;  %v496_v8 = vsub.bf16 %v1926_v2, %v495_v4  ;;  %v497_v9 = vsub.bf16 %v1923_v0, %v495_v4  ;;  %v534_v2 = vpop.permute.xlu0 %533  ;;  %v615_v53 = vpop.permute.xlu1 %614 }
 0x154   :  { %v498_v10 = vsub.bf16 %v1936_v29, %v495_v4  ;;  %v499_v11 = vsub.bf16 %v1933_v26, %v495_v4  ;;  %v500_v12 = vsub.bf16 %v1946_v57, %v495_v4  ;;  %v501_v13 = vsub.bf16 %v1943_v56, %v495_v4 }
 0x155   :  { %v492_v15 = vmax.f32 %v491_v6, 0.0  ;;  %v503_v16 = vsub.bf16 %v1953_v25, %v495_v4  ;;  %v1462_v1 = vmov 0.0  }
 0x157   :  { %v493_v17 = vadd.f32 1e-05, %v492_v15  ;;  %v539_v57 = vpop.permute.xlu0 %538  ;;  %v665_v4 = vpop.permute.xlu1 %664 }
 0x159   :  { %1423 = vrsqrt.f32 %v493_v17 }
 0x15b   :  { %v544_v36 = vpop.permute.xlu0 %543 }
 0x15f   :  { %v549_v40 = vpop.permute.xlu0 %548 }
 0x163   :  { %v1424_v21 = vpop.eup %1423  ;;  %v554_v46 = vpop.permute.xlu0 %553 }
 0x164   :  { %v504_v0 = vpack.c.bf16 %v1424_v21, %v1424_v21 }
 0x166   :  { %v505_v29 = vmul.bf16 %v504_v0, %v496_v8  ;;  %v506_v23 = vmul.bf16 %v504_v0, %v497_v9  ;;  %v507_v26 = vmul.bf16 %v504_v0, %v498_v10  ;;  %v508_v24 = vmul.bf16 %v504_v0, %v499_v11 }
 0x167   :  { %v509_v27 = vmul.bf16 %v504_v0, %v500_v12  ;;  %v510_v56 = vmul.bf16 %v504_v0, %v501_v13  ;;  %v511_v28 = vmul.bf16 %v504_v0, %v502_v7  ;;  %v512_v30 = vmul.bf16 %v504_v0, %v503_v16  ;;  %v559_v50 = vpop.permute.xlu0 %558  ;;  %v675_v7 = vpop.permute.xlu1 %674 }
 0x168   :  { %v561_v31 = vmul.bf16 %v524_v14, %v505_v29  ;;  %v562_v25 = vmul.bf16 %v529_v19, %v506_v23  ;;  %v563_v35 = vmul.bf16 %v534_v2, %v507_v26  ;;  %v564_v38 = vmul.bf16 %v539_v57, %v508_v24 }
 0x169   :  { %v565_v42 = vmul.bf16 %v544_v36, %v509_v27  ;;  %v566_v45 = vmul.bf16 %v549_v40, %v510_v56  ;;  %v567_v48 = vmul.bf16 %v554_v46, %v511_v28  ;;  %v568_v52 = vmul.bf16 %v559_v50, %v512_v30 }
 0x16a   :  { %v617_v32 = vadd.bf16 %v580_v18, %v561_v31  ;;  %v618_v34 = vadd.bf16 %v585_v20, %v562_v25  ;;  %v619_v37 = vadd.bf16 %v590_v22, %v563_v35  ;;  %v620_v41 = vadd.bf16 %v595_v33, %v564_v38 }
 0x16b   :  { %v621_v44 = vadd.bf16 %v600_v39, %v565_v42  ;;  %v622_v47 = vadd.bf16 %v605_v43, %v566_v45  ;;  %v623_v51 = vadd.bf16 %v610_v49, %v567_v48  ;;  %v624_v54 = vadd.bf16 %v615_v53, %v568_v52  ;;  %v660_v3 = vpop.permute.xlu0 %659  ;;  %v685_v9 = vpop.permute.xlu1 %684 }
 0x16c   :  { %1341 = vmatprep.subr.bf16.mxu1 %v617_v32 }
 0x16d   :  { %1342 = vmatpush3.bf16.msra.mxu1 %v617_v32 }
 0x16e   :  { %1343 = vmatprep.subr.bf16.mxu1 %v618_v34 }
 0x16f   :  { %v670_v6 = vpop.permute.xlu0 %669  ;;  %v695_v13 = vpop.permute.xlu1 %694 }
 0x171   :  { %1344 = vmatpush3.bf16.msra.mxu1 %v618_v34 }
 0x172   :  { %1345 = vmatprep.subr.bf16.mxu1 %v619_v37 }
 0x173   :  { %v680_v8 = vpop.permute.xlu0 %679  ;;  %v705_v22 = vpop.permute.xlu1 %704 }
 0x175   :  { %1346 = vmatpush3.bf16.msra.mxu1 %v619_v37 }
 0x176   :  { %1347 = vmatprep.subr.bf16.mxu1 %v620_v41 }
 0x177   :  { %v690_v11 = vpop.permute.xlu0 %689  ;;  %v715_v39 = vpop.permute.xlu1 %714 }
 0x179   :  { %1348 = vmatpush3.bf16.msra.mxu1 %v620_v41 }
 0x17a   :  { %1349 = vmatprep.subr.bf16.mxu1 %v621_v44 }
 0x17b   :  { %v700_v21 = vpop.permute.xlu0 %699 }
 0x17d   :  { %1350 = vmatpush3.bf16.msra.mxu1 %v621_v44 }
 0x17e   :  { %1351 = vmatprep.subr.bf16.mxu1 %v622_v47 }
 0x17f   :  { %v710_v37 = vpop.permute.xlu0 %709 }
 0x181   :  { %1352 = vmatpush3.bf16.msra.mxu1 %v622_v47 }
 0x182   :  { %1353 = vmatprep.subr.bf16.mxu1 %v623_v51 }
 0x185   :  { %1354 = vmatpush3.bf16.msra.mxu1 %v623_v51 }
 0x186   :  { %1355 = vmatprep.subr.bf16.mxu1 %v624_v54 }
 0x189   :  { %1356 = vmatpush3.bf16.msra.mxu1 %v624_v54 }
 0x18a   :  { %1373 = vmatprep.subr.bf16.mxu1 %v1462_v1 }
 0x18c   :  { %1358 = vmatmul.mubr.bf16.vlgmr.msra.gmra.mrb[0].mxu1 %v1416_v55  ;;  %v720_v55 = vpop.permute.xlu0 %719 }
 0x18d   :  { %1361 = vmatprep.mubr.bf16.mxu1 %v1417_v58 }
 0x194   :  { %1362 = vmatmul.mubr.bf16.gmra.mrb[4].mxu1 %v1418_v59 }
 0x195   :  { %1365 = vmatprep.mubr.bf16.mxu1 %v1419_v60 }
 0x19c   :  { %1366 = vmatmul.mubr.bf16.gmra.mrb[8].mxu1 %v1420_v61 }
 0x19d   :  { %1369 = vmatprep.mubr.bf16.mxu1 %v1421_v62  ;;  %v725_v62 = vpop.permute.xlu1 %724 }
 0x1a4   :  { %1370 = vmatmul.mubr.bf16.gmra.mrb[12].mxu1 %v1422_v63 }
 0x1a5   :  { %1389 = vmatprep.mubr.msk.bf16.mxu1 %vm1463_vm1, %v1462_v1 }
 0x25f   :  { %v1359_v10 = vpop.f32.mrb[0].mxu1 }
 0x260   :  { %v819_v12 = vpop.f32.mrb[1].mxu1  ;;  %v828_v15 = vadd.f32 %v1359_v10, %v670_v6 }
 0x261   :  { %v1360_v14 = vpop.f32.mrb[2].mxu1  ;;  %v820_v18 = vadd.f32 %v819_v12, %v660_v3 }
 0x262   :  { %v831_v16 = vadd.f32 %v1360_v14, %v675_v7  ;;  %v822_v17 = vpop.f32.mrb[3].mxu1 }
 0x263   :  { %v823_v19 = vadd.f32 %v822_v17, %v665_v4 }
 0x264   :  { %v915_v20 = vpack.c.bf16 %v831_v16, %v828_v15 }
 0x265   :  { %v914_v2 = vpack.c.bf16 %v823_v19, %v820_v18  ;;  %v730_v19 = vpop.permute.xlu0 %729 }
 0x266   :  { %v1994_v0 = vmax.bf16 %v1461_v5, %v915_v20 }
 0x267   :  { %v1997_v29 = vmax.bf16 %v1461_v5, %v914_v2  ;;  %v1363_v23 = vpop.f32.mrb[4].mxu1 }
 0x268   :  { %v835_v26 = vpop.f32.mrb[5].mxu1  ;;  %v932_v24 = vunpack.c.l.bf16 %v1994_v0  ;;  %v933_v28 = vunpack.c.h.bf16 %v1994_v0  ;;  %v844_v30 = vadd.f32 %v1363_v23, %v690_v11 }
 0x269   :  { %v930_v57 = vunpack.c.l.bf16 %v1997_v29  ;;  %v931_v27 = vunpack.c.h.bf16 %v1997_v29  ;;  %v1364_v56 = vpop.f32.mrb[6].mxu1  ;;  %v836_v31 = vadd.f32 %v835_v26, %v680_v8 }
 0x26a   :  { %v847_v25 = vadd.f32 %v1364_v56, %v695_v13  ;;  %v838_v32 = vpop.f32.mrb[7].mxu1  ;;  %v970_v40 = vmul.f32 %v932_v24, %v932_v24  ;;  %v971_v45 = vmul.f32 %v933_v28, %v933_v28 }
 0x26b   :  { %v946_v33 = vadd.f32 %v931_v27, %v930_v57  ;;  %v968_v34 = vmul.f32 %v930_v57, %v930_v57  ;;  %v969_v35 = vmul.f32 %v931_v27, %v931_v27  ;;  %v839_v36 = vadd.f32 %v838_v32, %v685_v9 }
 0x26c   :  { %v917_v38 = vpack.c.bf16 %v847_v25, %v844_v30 }
 0x26d   :  { %v947_v41 = vadd.f32 %v946_v33, %v932_v24  ;;  %v984_v42 = vadd.f32 %v969_v35, %v968_v34  ;;  %v916_v43 = vpack.c.bf16 %v839_v36, %v836_v31 }
 0x26e   :  { %v2004_v44 = vmax.bf16 %v1461_v5, %v917_v38 }
 0x26f   :  { %v985_v46 = vadd.f32 %v984_v42, %v970_v40  ;;  %v2007_v47 = vmax.bf16 %v1461_v5, %v916_v43  ;;  %v948_v48 = vadd.f32 %v947_v41, %v933_v28  ;;  %v1367_v49 = vpop.f32.mrb[8].mxu1 }
 0x270   :  { %v851_v50 = vpop.f32.mrb[9].mxu1  ;;  %v936_v58 = vunpack.c.l.bf16 %v2004_v44  ;;  %v860_v59 = vadd.f32 %v1367_v49, %v710_v37  ;;  %v937_v7 = vunpack.c.h.bf16 %v2004_v44 }
 0x271   :  { %v934_v51 = vunpack.c.l.bf16 %v2007_v47  ;;  %v935_v52 = vunpack.c.h.bf16 %v2007_v47  ;;  %v986_v53 = vadd.f32 %v985_v46, %v971_v45  ;;  %v1368_v54 = vpop.f32.mrb[10].mxu1  ;;  %v852_v4 = vadd.f32 %v851_v50, %v700_v21  ;;  %v735_v21 = vpop.permute.xlu1 %734 }
 0x272   :  { %v863_v60 = vadd.f32 %v1368_v54, %v715_v39  ;;  %v854_v61 = vpop.f32.mrb[11].mxu1  ;;  %v974_v13 = vmul.f32 %v936_v58, %v936_v58  ;;  %v975_v20 = vmul.f32 %v937_v7, %v937_v7 }
 0x273   :  { %v949_v63 = vadd.f32 %v948_v48, %v934_v51  ;;  %v972_v3 = vmul.f32 %v934_v51, %v934_v51  ;;  %v855_v6 = vadd.f32 %v854_v61, %v705_v22  ;;  %v973_v10 = vmul.f32 %v935_v52, %v935_v52 }
 0x274   :  { %v919_v8 = vpack.c.bf16 %v863_v60, %v860_v59 }
 0x275   :  { %v950_v9 = vadd.f32 %v949_v63, %v935_v52  ;;  %v987_v11 = vadd.f32 %v986_v53, %v972_v3  ;;  %v918_v12 = vpack.c.bf16 %v855_v6, %v852_v4 }
 0x276   :  { %v2014_v16 = vmax.bf16 %v1461_v5, %v919_v8 }
 0x277   :  { %v951_v14 = vadd.f32 %v950_v9, %v936_v58  ;;  %v988_v15 = vadd.f32 %v987_v11, %v973_v10  ;;  %v2017_v17 = vmax.bf16 %v1461_v5, %v918_v12  ;;  %v1371_v18 = vpop.f32.mrb[12].mxu1 }
 0x278   :  { %v867_v2 = vpop.f32.mrb[13].mxu1  ;;  %v876_v27 = vadd.f32 %v1371_v18, %v730_v19  ;;  %v940_v30 = vunpack.c.l.bf16 %v2014_v16  ;;  %v941_v36 = vunpack.c.h.bf16 %v2014_v16 }
 0x279   :  { %v989_v22 = vadd.f32 %v988_v15, %v974_v13  ;;  %v938_v23 = vunpack.c.l.bf16 %v2017_v17  ;;  %v939_v26 = vunpack.c.h.bf16 %v2017_v17  ;;  %v952_v24 = vadd.f32 %v951_v14, %v937_v7  ;;  %v1372_v57 = vpop.f32.mrb[14].mxu1 }
 0x27a   :  { %v879_v56 = vadd.f32 %v1372_v57, %v735_v21  ;;  %v870_v28 = vpop.f32.mrb[15].mxu1  ;;  %v868_v33 = vadd.f32 %v867_v2, %v720_v55  ;;  %v978_v41 = vmul.f32 %v940_v30, %v940_v30  ;;  %v979_v48 = vmul.f32 %v941_v36, %v941_v36 }
 0x27b   :  { %v953_v31 = vadd.f32 %v952_v24, %v938_v23  ;;  %v976_v25 = vmul.f32 %v938_v23, %v938_v23  ;;  %v990_v32 = vadd.f32 %v989_v22, %v975_v20  ;;  %v871_v35 = vadd.f32 %v870_v28, %v725_v62 }
 0x27c   :  { %v921_v34 = vpack.c.bf16 %v879_v56, %v876_v27  ;;  %v977_v38 = vmul.f32 %v939_v26, %v939_v26 }
 0x27d   :  { %v954_v37 = vadd.f32 %v953_v31, %v939_v26  ;;  %v991_v39 = vadd.f32 %v990_v32, %v976_v25  ;;  %v920_v40 = vpack.c.bf16 %v871_v35, %v868_v33  ;;  %v1040_v35 = vpop.permute.xlu0 %1039 }
 0x27e   :  { %v2024_v45 = vmax.bf16 %v1461_v5, %v921_v34 }
 0x27f   :  { %v955_v42 = vadd.f32 %v954_v37, %v940_v30  ;;  %v992_v43 = vadd.f32 %v991_v39, %v977_v38  ;;  %v928_v46 = vmax.bf16 %v1461_v5, %v920_v40  ;;  %v1096_v37 = vpop.permute.xlu1 %1095 }
 0x280   :  { %v944_v54 = vunpack.c.l.bf16 %v2024_v45  ;;  %v945_v59 = vunpack.c.h.bf16 %v2024_v45 }
 0x281   :  { %v993_v49 = vadd.f32 %v992_v43, %v978_v41  ;;  %v956_v50 = vadd.f32 %v955_v42, %v941_v36  ;;  %v942_v51 = vunpack.c.l.bf16 %v928_v46  ;;  %v943_v52 = vunpack.c.h.bf16 %v928_v46  ;;  %v1045_v38 = vpop.permute.xlu0 %1044 }
 0x282   :  { %v982_v63 = vmul.f32 %v944_v54, %v944_v54  ;;  %v983_v6 = vmul.f32 %v945_v59, %v945_v59 }
 0x283   :  { %v994_v53 = vadd.f32 %v993_v49, %v979_v48  ;;  %v957_v55 = vadd.f32 %v956_v50, %v942_v51  ;;  %v980_v58 = vmul.f32 %v942_v51, %v942_v51  ;;  %v981_v61 = vmul.f32 %v943_v52, %v943_v52  ;;  %v1101_v39 = vpop.permute.xlu1 %1100 }
 0x285   :  { %v958_v60 = vadd.f32 %v957_v55, %v943_v52  ;;  %v995_v62 = vadd.f32 %v994_v53, %v980_v58  ;;  %v1050_v40 = vpop.permute.xlu0 %1049 }
 0x287   :  { %v959_v3 = vadd.f32 %v958_v60, %v944_v54  ;;  %v996_v4 = vadd.f32 %v995_v62, %v981_v61  ;;  %v1106_v43 = vpop.permute.xlu1 %1105 }
 0x289   :  { %v960_v5 = vadd.f32 %v959_v3, %v945_v59  ;;  %v997_v7 = vadd.f32 %v996_v4, %v982_v63 }
 0x28b   :  { %v961_v8 = vrot.slane %v960_v5, 4  ;;  %v998_v9 = vadd.f32 %v997_v7, %v983_v6  ;;  %v1111_v52 = vpop.permute.xlu1 %1110 }
 0x28d   :  { %v962_v10 = vadd.f32 %v961_v8, %v960_v5  ;;  %v999_v11 = vrot.slane %v998_v9, 4 }
 0x28f   :  { %v963_v12 = vrot.slane %v962_v10, 2  ;;  %v1000_v13 = vadd.f32 %v999_v11, %v998_v9  ;;  %v1116_v60 = vpop.permute.xlu1 %1115 }
 0x291   :  { %v964_v14 = vadd.f32 %v963_v12, %v962_v10  ;;  %v1001_v15 = vrot.slane %v1000_v13, 2 }
 0x293   :  { %v965_v18 = vrot.slane %v964_v14, 1  ;;  %v1002_v19 = vadd.f32 %v1001_v15, %v1000_v13  ;;  %v1121_v3 = vpop.permute.xlu1 %1120  ;;  %v1141_v15 = vld [vmem:[%s2070_s9] sm:$0x3]  ;;  %s1464_s9 = smov [#allocation2]  }
 0x295   :  { %v966_v20 = vadd.f32 %v965_v18, %v964_v14  ;;  %v1003_v2 = vrot.slane %v1002_v19, 1 }
 0x297   :  { %v967_v21 = vmul.f32 0.0078125, %v966_v20  ;;  %v1004_v22 = vadd.f32 %v1003_v2, %v1002_v19  ;;  %v1126_v9 = vpop.permute.xlu1 %1125 }
 0x299   :  { %v1005_v23 = vmul.f32 0.0078125, %v1004_v22  ;;  %v1006_v26 = vmul.f32 %v967_v21, %v967_v21  ;;  %v1011_v24 = vpack.c.bf16 %v967_v21, %v967_v21 }
 0x29b   :  { %v1007_v57 = vsub.f32 %v1005_v23, %v1006_v26  ;;  %v1018_v27 = vsub.bf16 %v928_v46, %v1011_v24  ;;  %v1012_v56 = vsub.bf16 %v1997_v29, %v1011_v24  ;;  %v1013_v28 = vsub.bf16 %v1994_v0, %v1011_v24  ;;  %v1131_v13 = vpop.permute.xlu1 %1130 }
 0x29c   :  { %v1014_v30 = vsub.bf16 %v2007_v47, %v1011_v24  ;;  %v1015_v31 = vsub.bf16 %v2004_v44, %v1011_v24  ;;  %v1016_v25 = vsub.bf16 %v2017_v17, %v1011_v24  ;;  %v1017_v32 = vsub.bf16 %v2014_v16, %v1011_v24 }
 0x29d   :  { %v1008_v33 = vmax.f32 %v1007_v57, 0.0  ;;  %v1019_v34 = vsub.bf16 %v2024_v45, %v1011_v24  ;;  %v1055_v45 = vpop.permute.xlu0 %1054 }
 0x29f   :  { %v1009_v36 = vadd.f32 1e-05, %v1008_v33 }
 0x2a1   :  { %1425 = vrsqrt.f32 %v1009_v36  ;;  %v1060_v55 = vpop.permute.xlu0 %1059 }
 0x2a5   :  { %v1065_v61 = vpop.permute.xlu0 %1064 }
 0x2a9   :  { %v1070_v5 = vpop.permute.xlu0 %1069 }
 0x2ab   :  { %v1426_v29 = vpop.eup %1425 }
 0x2ac   :  { %v1020_v0 = vpack.c.bf16 %v1426_v29, %v1426_v29 }
 0x2ad   :  { %v1075_v10 = vpop.permute.xlu0 %1074 }
 0x2ae   :  { %v1027_v41 = vmul.bf16 %v1020_v0, %v1018_v27  ;;  %v1021_v47 = vmul.bf16 %v1020_v0, %v1012_v56  ;;  %v1022_v42 = vmul.bf16 %v1020_v0, %v1013_v28  ;;  %v1023_v44 = vmul.bf16 %v1020_v0, %v1014_v30  ;;  %v1202_v28 = vld [vmem:[%s2072_s11] sm:$0x3]  ;;  %s1235_s11 = sshll.u32 %s1464_s9, 4  ;;  %s1236_s11 = int_to_ptr.vmem [resolvable:$true] %s1235_s11 }
 0x2af   :  { %v1024_v17 = vmul.bf16 %v1020_v0, %v1015_v31  ;;  %v1025_v46 = vmul.bf16 %v1020_v0, %v1016_v25  ;;  %v1026_v16 = vmul.bf16 %v1020_v0, %v1017_v32  ;;  %v1028_v48 = vmul.bf16 %v1020_v0, %v1019_v34  ;;  %s1437_s28 = scalar_lea.vmem %s1236_s11, 64  ;;  %p1442_p1 = scmp.lt.s32.totalorder %s1236_s11, %s1236_s11 }
 0x2b0   :  { %v1077_v49 = vmul.bf16 %v1040_v35, %v1021_v47  ;;  %v1078_v51 = vmul.bf16 %v1045_v38, %v1022_v42  ;;  %v1079_v54 = vmul.bf16 %v1050_v40, %v1023_v44  ;;  %v1083_v8 = vmul.bf16 %v1070_v5, %v1027_v41  ;;  %p1438_p0 = scmp.ne.s32.totalorder %s1236_s11, %s1437_s28  ;;  %p1443_p2 = scmp.lt.s32.totalorder %s1437_s28, %s1437_s28 }
 0x2b1   :  { %v1080_v59 = vmul.bf16 %v1055_v45, %v1024_v17  ;;  %v1081_v63 = vmul.bf16 %v1060_v55, %v1025_v46  ;;  %v1082_v6 = vmul.bf16 %v1065_v61, %v1026_v16  ;;  %v1084_v12 = vmul.bf16 %v1075_v10, %v1028_v48  ;;  %v1146_v18 = vpop.permute.xlu0 %1145 }
 0x2b2   :  { %v1133_v50 = vadd.bf16 %v1096_v37, %v1077_v49  ;;  %v1134_v53 = vadd.bf16 %v1101_v39, %v1078_v51  ;;  %v1135_v58 = vadd.bf16 %v1106_v43, %v1079_v54  ;;  %v1139_v11 = vadd.bf16 %v1126_v9, %v1083_v8  ;;  %p1444_p3 = por %p1443_p2, %p1442_p1 }
 0x2b3   :  { %v1136_v62 = vadd.bf16 %v1111_v52, %v1080_v59  ;;  %v1137_v4 = vadd.bf16 %v1116_v60, %v1081_v63  ;;  %v1138_v7 = vadd.bf16 %v1121_v3, %v1082_v6  ;;  %v1140_v14 = vadd.bf16 %v1131_v13, %v1084_v12 }
 0x2b4   :  { %1374 = vmatpush3.bf16.msra.mxu1 %v1133_v50  ;;  %v1204_v32 = vrot.slane %v1202_v28, 6  ;;  %v1211_v41 = vmul.f32 -0.5, %v1202_v28  ;;  %p1445_p4 = pnand %p1444_p3, %p1438_p0 }
 0x2b5   :  { %1375 = vmatprep.subr.bf16.mxu1 %v1462_v1 }
 0x2b6   :  { %v1212_v42 = vmul.f32 %v1211_v41, %v1202_v28 }
 0x2b8   :  { %1376 = vmatpush3.bf16.msra.mxu1 %v1134_v53 }
 0x2b9   :  { %1377 = vmatprep.subr.bf16.mxu1 %v1462_v1 }
 0x2bc   :  { %1378 = vmatpush3.bf16.msra.mxu1 %v1135_v58 }
 0x2bd   :  { %1379 = vmatprep.subr.bf16.mxu1 %v1462_v1 }
 0x2c0   :  { %1380 = vmatpush3.bf16.msra.mxu1 %v1136_v62 }
 0x2c1   :  { %1381 = vmatprep.subr.bf16.mxu1 %v1462_v1 }
 0x2c4   :  { %1382 = vmatpush3.bf16.msra.mxu1 %v1137_v4 }
 0x2c5   :  { %1383 = vmatprep.subr.bf16.mxu1 %v1462_v1 }
 0x2c8   :  { %1384 = vmatpush3.bf16.msra.mxu1 %v1138_v7 }
 0x2c9   :  { %1385 = vmatprep.subr.bf16.mxu1 %v1462_v1 }
 0x2cc   :  { %1386 = vmatpush3.bf16.msra.mxu1 %v1139_v11 }
 0x2cd   :  { %1387 = vmatprep.subr.bf16.mxu1 %v1462_v1 }
 0x2d0   :  { %1388 = vmatpush3.bf16.msra.mxu1 %v1140_v14 }
 0x2d3   :  { %1390 = vmatmul.mubr.bf16.vlgmr.msra.gmra.mrb[16].mxu1 %v1141_v15 }
 0x3a6   :  { %v1182_v19 = vpop.f32.mrb[16].mxu1 }
 0x3a7   :  { %v1183_v20 = vadd.f32 %v1182_v19, %v1146_v18  ;;  %v1391_v2 = vpop.f32.mrb[17].mxu1 }
 0x3a8   :  { %v1185_v21 = vpop.f32.mrb[18].mxu1 }
 0x3a9   :  { %v1189_v22 = vmin.f32 %v1183_v20, 20.0  ;;  %v1392_v23 = vpop.f32.mrb[19].mxu1  ;;  %vm1188_vm3 = vcmp.gt.f32.partialorder %v1183_v20, 20.0 }
 0x3ab   :  { %v1190_v26 = vmul.f32 1.442695, %v1189_v22 }
 0x3ad   :  { %1427 = vpow2.f32 %v1190_v26 }
 0x3b7   :  { %v1428_v24 = vpop.eup %1427 }
 0x3b8   :  { %v1192_v57 = vadd.f32 1.0, %v1428_v24  ;;  %v1195_v1 = vmul.f32 -0.5, %v1428_v24  ;;  %v1198_v56 = vand.u32 2147483647, %v1428_v24 }
 0x3ba   :  { %1429 = vlog2.f32 %v1192_v57  ;;  %v1196_v27 = vadd.f32 1.0, %v1195_v1  ;;  %vm1199_vm2 = vcmp.lt.f32.partialorder %v1198_v56, 0.0004427343 }
 0x3bc   :  { %v1197_v25 = vmul.f32 %v1428_v24, %v1196_v27 }
 0x3c4   :  { %v1430_v30 = vpop.eup %1429 }
 0x3c5   :  { %v1194_v31 = vmul.f32 0.6931472, %v1430_v30 }
 0x3c7   :  { %v1200_v33 = vsel %vm1199_vm2, %v1197_v25, %v1194_v31 }
 0x3c8   :  { %v1201_v34 = vsel %vm1188_vm3, %v1183_v20, %v1200_v33 }
 0x3c9   :  { %v1206_v35 = vmul.f32 %v1204_v32, %v1201_v34 }
 0x3cb   :  { %v1208_v36 = vrot.slane %v1206_v35, 2 }
 0x3cd   :  { %v1210_v37 = vadd.f32 %v1208_v36, %v1183_v20 }
 0x3cf   :  { %1431 = vtanh.f32 %v1210_v37 }
 0x3d0   :  { %1433 = vlog2.f32 %v1201_v34 }
 0x3d9   :  { %v1432_v38 = vpop.eup %1431 }
 0x3da   :  { %1227 = vst [vmem:[#allocation2] sm:$0x3] %v1432_v38  ;;  %v1221_v39 = vmul.f32 %v1432_v38, %v1432_v38  ;;  %v1434_v29 = vpop.eup %1433 }
 0x3db   :  { %v1214_v47 = vmul.f32 0.6931472, %v1434_v29 }
 0x3dc   :  { %v1222_v40 = vsub.f32 1.0, %v1221_v39 }
 0x3dd   :  { %v1216_v44 = vrot.slane %v1214_v47, 2 }
 0x3de   :  { %v1223_v0 = vadd.f32 1e-07, %v1222_v40 }
 0x3df   :  { %v1218_v43 = vsub.f32 %v1212_v42, %v1216_v44 }
 0x3e0   :  { %1435 = vlog2.f32 %v1223_v0 }
 0x3e1   :  { %v1267_v46 = vadd.f32 -0.9189385, %v1218_v43 }
 0x3ea   :  { %v1436_v17 = vpop.eup %1435 }
 0x3eb   :  { %v1225_v16 = vmul.f32 0.6931472, %v1436_v17 }
 0x3ed   :  { %v1226_v48 = vsub.f32 %v1267_v46, %v1225_v16 }
 0x3ef   :  { %1228 = vst [vmem:[#allocation2 + $0x2] sm:$0x3] %v1226_v48 }
 0x3f0   :  { %1448 = shalt.err (!%p1445_p4)
}
 0x3f1   :  { %s1449_s30 = scalar_lea.hbm %s2073_s12, 64 }
 0x3f2   :  { %p1450_p5 = scmp.ne.s32.totalorder %s2073_s12, %s1449_s30  ;;  %p1453_p6 = scmp.lt.u32.totalorder %s1449_s30, %s2073_s12 }
 0x3f4   :  { %p1455_p7 = pnand %p1453_p6, %p1450_p5 }
 0x3f6   :  { %1458 = shalt.err (!%p1455_p7)
}
 0x3f7   :  { %1238 = dma.vmem_to_hbm [thread:$0]  %s1236_s11, 64, %s2073_s12, [#allocation3]  }
 0x3f8   :  { %1459 = dma.done.wait [#allocation3], 64  }
 0x3f9   :  { %1460 = vsyncadd [#allocation3], 4294967232 }
 0x3fa   :  { %1242 = vsyncpa [#allocation3], 1 }

// kernel: tpu_custom_call.1
= control target key start
LH: loop header
LB: loop body
LE: loop exit
PB: predicated region body
PF: predicated region fallthrough
CT: control target
= control target key end

     0   :  { %vm219_vm0 = vcmask 80896   ;;  %v1461_v5 = vmov 0   ;;  %s2061_s0 = inlined_call_operand.vmem [shape: f32[128,10], index: 0, kind: input, shape index: {}]   ;;  %s2062_s1 = inlined_call_operand.vmem [shape: bf16[128,10], index: 1, kind: input, shape index: {}]   ;;  %s2063_s2 = inlined_call_operand.vmem [shape: f32[128,1], index: 2, kind: input, shape index: {}]   ;;  %s2064_s3 = inlined_call_operand.vmem [shape: f32[128,1], index: 3, kind: input, shape index: {}]   ;;  %s2065_s4 = inlined_call_operand.vmem [shape: f32[128,1], index: 4, kind: input, shape index: {}]   ;;  %s2066_s5 = inlined_call_operand.vmem [shape: bf16[128,128], index: 5, kind: input, shape index: {}]   ;;  %s2067_s6 = inlined_call_operand.vmem [shape: f32[128,1], index: 6, kind: input, shape index: {}]   ;;  %s2068_s7 = inlined_call_operand.vmem [shape: f32[128,1], index: 7, kind: input, shape index: {}]   ;;  %s2069_s8 = inlined_call_operand.vmem [shape: f32[128,1], index: 8, kind: input, shape index: {}]   ;;  %s2070_s9 = inlined_call_operand.vmem [shape: bf16[4,128], index: 9, kind: input, shape index: {}]   ;;  %s2071_s10 = inlined_call_operand.vmem [shape: f32[4,1], index: 10, kind: input, shape index: {}]   ;;  %s2072_s11 = inlined_call_operand.vmem [shape: f32[2,128], index: 11, kind: input, shape index: {}]   ;;  %s2073_s12 = inlined_call_operand.hbm [shape: f32[4,128], index: 12, kind: output, shape index: {}]  }
   0x1   :  { %v43_v0 = vld [vmem:[%s2061_s0] sm:$0xff]  ;;  %v44_v1 = vld [vmem:[%s2061_s0 + $0x8] sm:$0xff]  ;;  %v45_v2 = vld [vmem:[%s2061_s0 + $0x10] sm:$0xff]  ;;  %1405 = vset.pattern.permute.xlu0 %v1461_v5  ;;  %1406 = vset.pattern.permute.xlu1 %v1461_v5 }
   0x2   :  { %v59_v3 = vpack.c.bf16 %v44_v1, %v43_v0  ;;  %v46_v4 = vld [vmem:[%s2061_s0 + $0x18] sm:$0xff]  ;;  %v83_v7 = vld [vmem:[%s2063_s2] sm:$0xff]  ;;  %v85_v9 = vld [vmem:[%s2063_s2 + $0x10] sm:$0xff] }
   0x3   :  { %v60_v6 = vpack.c.bf16 %v46_v4, %v45_v2  ;;  %101 = vperm.xlu0 %1405, %v83_v7   ;;  %v84_v10 = vld [vmem:[%s2063_s2 + $0x8] sm:$0xff]  ;;  %111 = vperm.xlu1 %1406, %v85_v9   ;;  %v86_v11 = vld [vmem:[%s2063_s2 + $0x18] sm:$0xff]  ;;  %v47_v12 = vld [vmem:[%s2061_s0 + $0x20] sm:$0xff] }
   0x4   :  { %1393 = vmatprep.subr.msk.bf16.mxu0 %vm219_vm0, %v59_v3  ;;  %v245_v8 = vsel %vm219_vm0, %v59_v3, 0  ;;  %v48_v13 = vld [vmem:[%s2061_s0 + $0x28] sm:$0xff]  ;;  %v87_v14 = vld [vmem:[%s2063_s2 + $0x20] sm:$0xff]  ;;  %v89_v18 = vld [vmem:[%s2063_s2 + $0x30] sm:$0xff] }
   0x5   :  { %1310 = vmatpush3.bf16.xpose.msra.mxu0 %v245_v8  ;;  %v248_v15 = vsel %vm219_vm0, %v60_v6, 0  ;;  %v61_v16 = vpack.c.bf16 %v48_v13, %v47_v12  ;;  %v88_v17 = vld [vmem:[%s2063_s2 + $0x28] sm:$0xff]  ;;  %v49_v19 = vld [vmem:[%s2061_s0 + $0x30] sm:$0xff]  ;;  %v50_v20 = vld [vmem:[%s2061_s0 + $0x38] sm:$0xff] }
   0x6   :  { %1394 = vmatprep.subr.msk.bf16.mxu0 %vm219_vm0, %v60_v6  ;;  %v90_v21 = vld [vmem:[%s2063_s2 + $0x38] sm:$0xff]  ;;  %v1407_v22 = vld [vmem:[%s2062_s1] sm:$0xff]   ;;  %v62_v25 = vpack.c.bf16 %v50_v20, %v49_v19  ;;  %v92_v26 = vld [vmem:[%s2063_s2 + $0x48] sm:$0xff] }
   0x7   :  { %106 = vperm.xlu0 %1405, %v84_v10   ;;  %116 = vperm.xlu1 %1406, %v86_v11   ;;  %v91_v23 = vld [vmem:[%s2063_s2 + $0x40] sm:$0xff]  ;;  %v251_v24 = vsel %vm219_vm0, %v61_v16, 0  ;;  %v93_v27 = vld [vmem:[%s2063_s2 + $0x50] sm:$0xff]  ;;  %v94_v28 = vld [vmem:[%s2063_s2 + $0x58] sm:$0xff] }
   0x8   :  { %1325 = vmatprep.mubr.msk.bf16.mxu0 %vm219_vm0, %v1407_v22  ;;  %v51_v29 = vld [vmem:[%s2061_s0 + $0x40] sm:$0xff]  ;;  %v52_v30 = vld [vmem:[%s2061_s0 + $0x48] sm:$0xff]  ;;  %v254_v32 = vsel %vm219_vm0, %v62_v25, 0  ;;  %v97_v35 = vld [vmem:[%s2063_s2 + $0x70] sm:$0xff] }
   0x9   :  { %v95_v31 = vld [vmem:[%s2063_s2 + $0x60] sm:$0xff]  ;;  %v63_v33 = vpack.c.bf16 %v52_v30, %v51_v29  ;;  %v96_v34 = vld [vmem:[%s2063_s2 + $0x68] sm:$0xff]  ;;  %v98_v38 = vld [vmem:[%s2063_s2 + $0x78] sm:$0xff] }
   0xa   :  { %v365_v36 = vld [vmem:[%s2064_s3] sm:$0xff]  ;;  %v366_v37 = vld [vmem:[%s2064_s3 + $0x8] sm:$0xff]  ;;  %v53_v41 = vld [vmem:[%s2061_s0 + $0x50] sm:$0xff] }
   0xb   :  { %121 = vperm.xlu0 %1405, %v87_v14   ;;  %126 = vperm.xlu1 %1406, %v88_v17   ;;  %v381_v39 = vld [vmem:[%s2065_s4] sm:$0xff]  ;;  %v382_v40 = vld [vmem:[%s2065_s4 + $0x8] sm:$0xff]  ;;  %v54_v42 = vld [vmem:[%s2061_s0 + $0x58] sm:$0xff]  ;;  %v513_v43 = vpack.c.bf16 %v366_v37, %v365_v36  ;;  %v257_v47 = vsel %vm219_vm0, %v63_v33, 0 }
   0xc   :  { %v367_v44 = vld [vmem:[%s2064_s3 + $0x10] sm:$0xff]  ;;  %v368_v45 = vld [vmem:[%s2064_s3 + $0x18] sm:$0xff]  ;;  %v569_v46 = vpack.c.bf16 %v382_v40, %v381_v39  ;;  %v64_v48 = vpack.c.bf16 %v54_v42, %v53_v41  ;;  %v369_v52 = vld [vmem:[%s2064_s3 + $0x20] sm:$0xff] }
   0xd   :  { %1312 = vmatpush3.bf16.xpose.msra.mxu0 %v248_v15  ;;  %v383_v49 = vld [vmem:[%s2065_s4 + $0x10] sm:$0xff]  ;;  %v384_v50 = vld [vmem:[%s2065_s4 + $0x18] sm:$0xff]  ;;  %v514_v51 = vpack.c.bf16 %v368_v45, %v367_v44  ;;  %v370_v53 = vld [vmem:[%s2064_s3 + $0x28] sm:$0xff] }
   0xe   :  { %1395 = vmatprep.subr.msk.bf16.mxu0 %vm219_vm0, %v61_v16  ;;  %v570_v54 = vpack.c.bf16 %v384_v50, %v383_v49  ;;  %v385_v55 = vld [vmem:[%s2065_s4 + $0x20] sm:$0xff]  ;;  %v386_v56 = vld [vmem:[%s2065_s4 + $0x28] sm:$0xff]  ;;  %v515_v59 = vpack.c.bf16 %v370_v53, %v369_v52  ;;  %v371_v60 = vld [vmem:[%s2064_s3 + $0x30] sm:$0xff]  ;;  %v260_v63 = vsel %vm219_vm0, %v64_v48, 0 }
   0xf   :  { %131 = vperm.xlu0 %1405, %v89_v18   ;;  %136 = vperm.xlu1 %1406, %v90_v21   ;;  %v55_v57 = vld [vmem:[%s2061_s0 + $0x60] sm:$0xff]  ;;  %v56_v58 = vld [vmem:[%s2061_s0 + $0x68] sm:$0xff]  ;;  %v372_v61 = vld [vmem:[%s2064_s3 + $0x38] sm:$0xff]  ;;  %v571_v62 = vpack.c.bf16 %v386_v56, %v385_v55 }
  0x10   :  { %v65_v0 = vpack.c.bf16 %v56_v58, %v55_v57  ;;  %v387_v1 = vld [vmem:[%s2065_s4 + $0x30] sm:$0xff]  ;;  %v388_v2 = vld [vmem:[%s2065_s4 + $0x38] sm:$0xff]  ;;  %v516_v3 = vpack.c.bf16 %v372_v61, %v371_v60  ;;  %v373_v7 = vld [vmem:[%s2064_s3 + $0x40] sm:$0xff] }
  0x11   :  { %v57_v4 = vld [vmem:[%s2061_s0 + $0x70] sm:$0xff]  ;;  %v58_v6 = vld [vmem:[%s2061_s0 + $0x78] sm:$0xff]  ;;  %v374_v8 = vld [vmem:[%s2064_s3 + $0x48] sm:$0xff]  ;;  %v572_v9 = vpack.c.bf16 %v388_v2, %v387_v1 }
  0x12   :  { %v263_v10 = vsel %vm219_vm0, %v65_v0, 0  ;;  %v389_v11 = vld [vmem:[%s2065_s4 + $0x40] sm:$0xff]  ;;  %v390_v12 = vld [vmem:[%s2065_s4 + $0x48] sm:$0xff]  ;;  %v375_v13 = vld [vmem:[%s2064_s3 + $0x50] sm:$0xff]  ;;  %v517_v15 = vpack.c.bf16 %v374_v8, %v373_v7  ;;  %v66_v19 = vpack.c.bf16 %v58_v6, %v57_v4 }
  0x13   :  { %141 = vperm.xlu0 %1405, %v91_v23   ;;  %146 = vperm.xlu1 %1406, %v92_v26   ;;  %v376_v14 = vld [vmem:[%s2064_s3 + $0x58] sm:$0xff]  ;;  %v391_v16 = vld [vmem:[%s2065_s4 + $0x50] sm:$0xff]  ;;  %v573_v18 = vpack.c.bf16 %v390_v12, %v389_v11 }
  0x14   :  { %v392_v17 = vld [vmem:[%s2065_s4 + $0x58] sm:$0xff]  ;;  %v518_v20 = vpack.c.bf16 %v376_v14, %v375_v13 }
  0x15   :  { %1314 = vmatpush3.bf16.xpose.msra.mxu0 %v251_v24 }
  0x16   :  { %1396 = vmatprep.subr.msk.bf16.mxu0 %vm219_vm0, %v62_v25 }
  0x17   :  { %151 = vperm.xlu0 %1405, %v93_v27   ;;  %156 = vperm.xlu1 %1406, %v94_v28  }
  0x1b   :  { %161 = vperm.xlu0 %1405, %v95_v31   ;;  %166 = vperm.xlu1 %1406, %v96_v34  }
  0x1d   :  { %1316 = vmatpush3.bf16.xpose.msra.mxu0 %v254_v32 }
  0x1e   :  { %1397 = vmatprep.subr.msk.bf16.mxu0 %vm219_vm0, %v63_v33 }
  0x1f   :  { %171 = vperm.xlu0 %1405, %v97_v35   ;;  %176 = vperm.xlu1 %1406, %v98_v38  }
  0x23   :  { %523 = vperm.xlu0 %1405, %v513_v43   ;;  %579 = vperm.xlu1 %1406, %v569_v46  }
  0x25   :  { %1318 = vmatpush3.bf16.xpose.msra.mxu0 %v257_v47 }
  0x26   :  { %1398 = vmatprep.subr.msk.bf16.mxu0 %vm219_vm0, %v64_v48 }
  0x27   :  { %528 = vperm.xlu0 %1405, %v514_v51   ;;  %584 = vperm.xlu1 %1406, %v570_v54  }
  0x2b   :  { %533 = vperm.xlu0 %1405, %v515_v59   ;;  %589 = vperm.xlu1 %1406, %v571_v62  }
  0x2d   :  { %1320 = vmatpush3.bf16.xpose.msra.mxu0 %v260_v63 }
  0x2e   :  { %1399 = vmatprep.subr.msk.bf16.mxu0 %vm219_vm0, %v65_v0 }
  0x2f   :  { %538 = vperm.xlu0 %1405, %v516_v3   ;;  %594 = vperm.xlu1 %1406, %v572_v9  }
  0x33   :  { %543 = vperm.xlu0 %1405, %v517_v15  }
  0x34   :  { %17 = vsyncpa [#allocation3], 0  ;;  %599 = vperm.xlu1 %1406, %v573_v18   ;;  %v377_v21 = vld [vmem:[%s2064_s3 + $0x60] sm:$0xff]  ;;  %v378_v22 = vld [vmem:[%s2064_s3 + $0x68] sm:$0xff]  ;;  %v574_v23 = vpack.c.bf16 %v392_v17, %v391_v16  ;;  %v266_v30 = vsel %vm219_vm0, %v66_v19, 0  ;;  %vm1463_vm1 = vmmov 0  }
  0x35   :  { %1322 = vmatpush3.bf16.xpose.msra.mxu0 %v263_v10  ;;  %v393_v24 = vld [vmem:[%s2065_s4 + $0x60] sm:$0xff]  ;;  %v394_v25 = vld [vmem:[%s2065_s4 + $0x68] sm:$0xff]  ;;  %v519_v26 = vpack.c.bf16 %v378_v22, %v377_v21  ;;  %v379_v27 = vld [vmem:[%s2064_s3 + $0x70] sm:$0xff] }
  0x36   :  { %1400 = vmatprep.subr.msk.bf16.mxu0 %vm219_vm0, %v66_v19  ;;  %v380_v28 = vld [vmem:[%s2064_s3 + $0x78] sm:$0xff]  ;;  %v575_v29 = vpack.c.bf16 %v394_v25, %v393_v24  ;;  %v395_v31 = vld [vmem:[%s2065_s4 + $0x70] sm:$0xff]  ;;  %v1408_v35 = vld [vmem:[%s2062_s1 + $0x8] sm:$0xff]  }
  0x37   :  { %548 = vperm.xlu0 %1405, %v518_v20   ;;  %v396_v32 = vld [vmem:[%s2065_s4 + $0x78] sm:$0xff]  ;;  %v520_v33 = vpack.c.bf16 %v380_v28, %v379_v27  ;;  %v1409_v36 = vld [vmem:[%s2062_s1 + $0x10] sm:$0xff]   ;;  %v641_v37 = vld [vmem:[%s2067_s6] sm:$0xff] }
  0x38   :  { %604 = vperm.xlu1 %1406, %v574_v23   ;;  %v576_v34 = vpack.c.bf16 %v396_v32, %v395_v31  ;;  %v642_v38 = vld [vmem:[%s2067_s6 + $0x8] sm:$0xff]  ;;  %v643_v39 = vld [vmem:[%s2067_s6 + $0x10] sm:$0xff]  ;;  %v644_v40 = vld [vmem:[%s2067_s6 + $0x18] sm:$0xff] }
  0x39   :  { %v1410_v41 = vld [vmem:[%s2062_s1 + $0x18] sm:$0xff]   ;;  %v1411_v42 = vld [vmem:[%s2062_s1 + $0x20] sm:$0xff]   ;;  %v646_v44 = vld [vmem:[%s2067_s6 + $0x28] sm:$0xff] }
  0x3a   :  { %v645_v43 = vld [vmem:[%s2067_s6 + $0x20] sm:$0xff]  ;;  %v647_v45 = vld [vmem:[%s2067_s6 + $0x30] sm:$0xff]  ;;  %v648_v46 = vld [vmem:[%s2067_s6 + $0x38] sm:$0xff] }
  0x3b   :  { %553 = vperm.xlu0 %1405, %v519_v26   ;;  %v1412_v47 = vld [vmem:[%s2062_s1 + $0x28] sm:$0xff]   ;;  %v1413_v48 = vld [vmem:[%s2062_s1 + $0x30] sm:$0xff]   ;;  %v649_v49 = vld [vmem:[%s2067_s6 + $0x40] sm:$0xff] }
  0x3c   :  { %609 = vperm.xlu1 %1406, %v575_v29   ;;  %v650_v50 = vld [vmem:[%s2067_s6 + $0x48] sm:$0xff]  ;;  %v651_v51 = vld [vmem:[%s2067_s6 + $0x50] sm:$0xff]  ;;  %v652_v52 = vld [vmem:[%s2067_s6 + $0x58] sm:$0xff] }
  0x3d   :  { %1324 = vmatpush3.bf16.xpose.msra.mxu0 %v266_v30  ;;  %v1414_v53 = vld [vmem:[%s2062_s1 + $0x38] sm:$0xff]   ;;  %v653_v54 = vld [vmem:[%s2067_s6 + $0x60] sm:$0xff]  ;;  %v654_v55 = vld [vmem:[%s2067_s6 + $0x68] sm:$0xff] }
  0x3e   :  { %v655_v56 = vld [vmem:[%s2067_s6 + $0x70] sm:$0xff]  ;;  %v882_v57 = vld [vmem:[%s2068_s7] sm:$0xff]  ;;  %v883_v58 = vld [vmem:[%s2068_s7 + $0x8] sm:$0xff] }
  0x3f   :  { %558 = vperm.xlu0 %1405, %v520_v33   ;;  %v656_v59 = vld [vmem:[%s2067_s6 + $0x78] sm:$0xff]  ;;  %v898_v60 = vld [vmem:[%s2069_s8] sm:$0xff]  ;;  %v899_v61 = vld [vmem:[%s2069_s8 + $0x8] sm:$0xff]  ;;  %v1029_v62 = vpack.c.bf16 %v883_v58, %v882_v57 }
  0x40   :  { %614 = vperm.xlu1 %1406, %v576_v34   ;;  %v884_v63 = vld [vmem:[%s2068_s7 + $0x10] sm:$0xff]  ;;  %v885_v0 = vld [vmem:[%s2068_s7 + $0x18] sm:$0xff]  ;;  %v1085_v1 = vpack.c.bf16 %v899_v61, %v898_v60  ;;  %v886_v6 = vld [vmem:[%s2068_s7 + $0x20] sm:$0xff] }
  0x41   :  { %v900_v2 = vld [vmem:[%s2069_s8 + $0x10] sm:$0xff]  ;;  %v901_v3 = vld [vmem:[%s2069_s8 + $0x18] sm:$0xff]  ;;  %v1030_v4 = vpack.c.bf16 %v885_v0, %v884_v63  ;;  %v887_v7 = vld [vmem:[%s2068_s7 + $0x28] sm:$0xff] }
  0x42   :  { %v1086_v8 = vpack.c.bf16 %v901_v3, %v900_v2  ;;  %v902_v9 = vld [vmem:[%s2069_s8 + $0x20] sm:$0xff]  ;;  %v903_v10 = vld [vmem:[%s2069_s8 + $0x28] sm:$0xff]  ;;  %v1031_v11 = vpack.c.bf16 %v887_v7, %v886_v6  ;;  %v888_v12 = vld [vmem:[%s2068_s7 + $0x30] sm:$0xff] }
  0x43   :  { %659 = vperm.xlu0 %1405, %v641_v37   ;;  %v889_v13 = vld [vmem:[%s2068_s7 + $0x38] sm:$0xff]  ;;  %v1087_v14 = vpack.c.bf16 %v903_v10, %v902_v9  ;;  %v904_v15 = vld [vmem:[%s2069_s8 + $0x30] sm:$0xff]  ;;  %v890_v18 = vld [vmem:[%s2068_s7 + $0x40] sm:$0xff] }
  0x44   :  { %1326 = vmatmul.mubr.msk.bf16.vlgmr.msra.gmra.mrb[0].mxu0 %vm219_vm0, %v1408_v35  ;;  %664 = vperm.xlu1 %1406, %v642_v38   ;;  %v905_v16 = vld [vmem:[%s2069_s8 + $0x38] sm:$0xff]  ;;  %v1032_v17 = vpack.c.bf16 %v889_v13, %v888_v12  ;;  %v891_v19 = vld [vmem:[%s2068_s7 + $0x48] sm:$0xff]  ;;  %v906_v21 = vld [vmem:[%s2069_s8 + $0x40] sm:$0xff] }
  0x45   :  { %1329 = vmatprep.mubr.msk.bf16.mxu0 %vm219_vm0, %v1409_v36  ;;  %v1088_v20 = vpack.c.bf16 %v905_v16, %v904_v15  ;;  %v907_v22 = vld [vmem:[%s2069_s8 + $0x48] sm:$0xff]  ;;  %v1033_v23 = vpack.c.bf16 %v891_v19, %v890_v18  ;;  %v892_v24 = vld [vmem:[%s2068_s7 + $0x50] sm:$0xff]  ;;  %v893_v25 = vld [vmem:[%s2068_s7 + $0x58] sm:$0xff] }
  0x46   :  { %v1089_v26 = vpack.c.bf16 %v907_v22, %v906_v21  ;;  %v908_v27 = vld [vmem:[%s2069_s8 + $0x50] sm:$0xff]  ;;  %v909_v28 = vld [vmem:[%s2069_s8 + $0x58] sm:$0xff]  ;;  %v1034_v29 = vpack.c.bf16 %v893_v25, %v892_v24  ;;  %v894_v30 = vld [vmem:[%s2068_s7 + $0x60] sm:$0xff] }
  0x47   :  { %669 = vperm.xlu0 %1405, %v643_v39   ;;  %v895_v31 = vld [vmem:[%s2068_s7 + $0x68] sm:$0xff]  ;;  %v1090_v32 = vpack.c.bf16 %v909_v28, %v908_v27  ;;  %v910_v33 = vld [vmem:[%s2069_s8 + $0x60] sm:$0xff]  ;;  %v896_v36 = vld [vmem:[%s2068_s7 + $0x70] sm:$0xff] }
  0x48   :  { %674 = vperm.xlu1 %1406, %v644_v40   ;;  %v911_v34 = vld [vmem:[%s2069_s8 + $0x68] sm:$0xff]  ;;  %v1035_v35 = vpack.c.bf16 %v895_v31, %v894_v30  ;;  %v897_v37 = vld [vmem:[%s2068_s7 + $0x78] sm:$0xff]  ;;  %v912_v39 = vld [vmem:[%s2069_s8 + $0x70] sm:$0xff] }
  0x49   :  { %v1091_v38 = vpack.c.bf16 %v911_v34, %v910_v33  ;;  %v913_v40 = vld [vmem:[%s2069_s8 + $0x78] sm:$0xff] }
  0x4b   :  { %679 = vperm.xlu0 %1405, %v645_v43   ;;  %v1142_v43 = vld [vmem:[%s2071_s10] sm:$0xf] }
  0x4c   :  { %1330 = vmatmul.mubr.msk.bf16.gmra.mrb[4].mxu0 %vm219_vm0, %v1410_v41  ;;  %684 = vperm.xlu1 %1406, %v646_v44   ;;  %v1036_v41 = vpack.c.bf16 %v897_v37, %v896_v36 }
  0x4d   :  { %1333 = vmatprep.mubr.msk.bf16.mxu0 %vm219_vm0, %v1411_v42  ;;  %v1092_v42 = vpack.c.bf16 %v913_v40, %v912_v39 }
  0x4f   :  { %689 = vperm.xlu0 %1405, %v647_v45  }
  0x50   :  { %694 = vperm.xlu1 %1406, %v648_v46   ;;  %v1415_v46 = vld [vmem:[%s2066_s5] sm:$0xff]  }
  0x51   :  { %1357 = vmatprep.mubr.bf16.mxu1 %v1415_v46 }
  0x53   :  { %699 = vperm.xlu0 %1405, %v649_v49  }
  0x54   :  { %1334 = vmatmul.mubr.msk.bf16.gmra.mrb[8].mxu0 %vm219_vm0, %v1412_v47  ;;  %704 = vperm.xlu1 %1406, %v650_v50  }
  0x55   :  { %1337 = vmatprep.mubr.msk.bf16.mxu0 %vm219_vm0, %v1413_v48 }
  0x57   :  { %709 = vperm.xlu0 %1405, %v651_v51  }
  0x58   :  { %714 = vperm.xlu1 %1406, %v652_v52  }
  0x5b   :  { %719 = vperm.xlu0 %1405, %v653_v54  }
  0x5c   :  { %1338 = vmatmul.mubr.msk.bf16.gmra.mrb[12].mxu0 %vm219_vm0, %v1414_v53  ;;  %724 = vperm.xlu1 %1406, %v654_v55  }
  0x5f   :  { %729 = vperm.xlu0 %1405, %v655_v56  }
  0x60   :  { %734 = vperm.xlu1 %1406, %v656_v59  }
  0x63   :  { %1039 = vperm.xlu0 %1405, %v1029_v62  }
  0x64   :  { %1095 = vperm.xlu1 %1406, %v1085_v1  }
  0x67   :  { %1044 = vperm.xlu0 %1405, %v1030_v4  }
  0x68   :  { %1100 = vperm.xlu1 %1406, %v1086_v8  }
  0x6b   :  { %1049 = vperm.xlu0 %1405, %v1031_v11  }
  0x6c   :  { %1105 = vperm.xlu1 %1406, %v1087_v14  }
  0x6f   :  { %1054 = vperm.xlu0 %1405, %v1032_v17  }
  0x70   :  { %1110 = vperm.xlu1 %1406, %v1088_v20  }
  0x73   :  { %1059 = vperm.xlu0 %1405, %v1033_v23  }
  0x74   :  { %1115 = vperm.xlu1 %1406, %v1089_v26  }
  0x77   :  { %1064 = vperm.xlu0 %1405, %v1034_v29  }
  0x78   :  { %1120 = vperm.xlu1 %1406, %v1090_v32  }
  0x7b   :  { %1069 = vperm.xlu0 %1405, %v1035_v35  }
  0x7c   :  { %1125 = vperm.xlu1 %1406, %v1091_v38  }
  0x7f   :  { %1074 = vperm.xlu0 %1405, %v1036_v41  }
  0x80   :  { %1130 = vperm.xlu1 %1406, %v1092_v42  }
  0x82   :  { %v102_v44 = vpop.permute.xlu0 %101  ;;  %v112_v45 = vpop.permute.xlu1 %111 }
  0x83   :  { %1145 = vperm.xlu0 %1405, %v1142_v43  }
  0x86   :  { %v107_v47 = vpop.permute.xlu0 %106  ;;  %v117_v48 = vpop.permute.xlu1 %116 }
  0x8a   :  { %v122_v49 = vpop.permute.xlu0 %121  ;;  %v127_v50 = vpop.permute.xlu1 %126 }
  0x8e   :  { %v132_v52 = vpop.permute.xlu0 %131  ;;  %v137_v54 = vpop.permute.xlu1 %136 }
  0x92   :  { %v142_v63 = vpop.permute.xlu0 %141  ;;  %v147_v1 = vpop.permute.xlu1 %146 }
  0x96   :  { %v152_v19 = vpop.permute.xlu0 %151  ;;  %v157_v21 = vpop.permute.xlu1 %156 }
  0x9a   :  { %v162_v37 = vpop.permute.xlu0 %161  ;;  %v167_v42 = vpop.permute.xlu1 %166 }
 0x117   :  { %v1327_v51 = vpop.f32.mrb[0].mxu0 }
 0x118   :  { %v302_v53 = vpop.f32.mrb[1].mxu0  ;;  %v311_v56 = vadd.f32 %v1327_v51, %v112_v45 }
 0x119   :  { %v1328_v55 = vpop.f32.mrb[2].mxu0  ;;  %v303_v59 = vadd.f32 %v302_v53, %v102_v44 }
 0x11a   :  { %v314_v57 = vadd.f32 %v1328_v55, %v117_v48  ;;  %v305_v58 = vpop.f32.mrb[3].mxu0 }
 0x11b   :  { %v306_v60 = vadd.f32 %v305_v58, %v107_v47 }
 0x11c   :  { %v398_v61 = vpack.c.bf16 %v314_v57, %v311_v56 }
 0x11d   :  { %v397_v62 = vpack.c.bf16 %v306_v60, %v303_v59  ;;  %v172_v59 = vpop.permute.xlu0 %171 }
 0x11e   :  { %v1923_v0 = vmax.bf16 %v1461_v5, %v398_v61 }
 0x11f   :  { %v1926_v2 = vmax.bf16 %v1461_v5, %v397_v62  ;;  %v1331_v3 = vpop.f32.mrb[4].mxu0  ;;  %v177_v62 = vpop.permute.xlu1 %176 }
 0x120   :  { %v318_v4 = vpop.f32.mrb[5].mxu0  ;;  %v415_v6 = vunpack.c.l.bf16 %v1923_v0  ;;  %v416_v10 = vunpack.c.h.bf16 %v1923_v0  ;;  %v327_v11 = vadd.f32 %v1331_v3, %v132_v52 }
 0x121   :  { %v413_v7 = vunpack.c.l.bf16 %v1926_v2  ;;  %v414_v8 = vunpack.c.h.bf16 %v1926_v2  ;;  %v1332_v9 = vpop.f32.mrb[6].mxu0  ;;  %v319_v12 = vadd.f32 %v318_v4, %v122_v49 }
 0x122   :  { %v330_v13 = vadd.f32 %v1332_v9, %v137_v54  ;;  %v321_v14 = vpop.f32.mrb[7].mxu0  ;;  %v454_v22 = vmul.f32 %v415_v6, %v415_v6  ;;  %v455_v27 = vmul.f32 %v416_v10, %v416_v10 }
 0x123   :  { %v429_v15 = vadd.f32 %v414_v8, %v413_v7  ;;  %v452_v16 = vmul.f32 %v413_v7, %v413_v7  ;;  %v453_v17 = vmul.f32 %v414_v8, %v414_v8  ;;  %v322_v18 = vadd.f32 %v321_v14, %v127_v50 }
 0x124   :  { %v400_v20 = vpack.c.bf16 %v330_v13, %v327_v11 }
 0x125   :  { %v430_v23 = vadd.f32 %v429_v15, %v415_v6  ;;  %v468_v24 = vadd.f32 %v453_v17, %v452_v16  ;;  %v399_v25 = vpack.c.bf16 %v322_v18, %v319_v12 }
 0x126   :  { %v1933_v26 = vmax.bf16 %v1461_v5, %v400_v20 }
 0x127   :  { %v469_v28 = vadd.f32 %v468_v24, %v454_v22  ;;  %v1936_v29 = vmax.bf16 %v1461_v5, %v399_v25  ;;  %v431_v30 = vadd.f32 %v430_v23, %v416_v10  ;;  %v1335_v31 = vpop.f32.mrb[8].mxu0 }
 0x128   :  { %v334_v32 = vpop.f32.mrb[9].mxu0  ;;  %v419_v38 = vunpack.c.l.bf16 %v1933_v26  ;;  %v343_v39 = vadd.f32 %v1335_v31, %v152_v19  ;;  %v420_v47 = vunpack.c.h.bf16 %v1933_v26 }
 0x129   :  { %v417_v33 = vunpack.c.l.bf16 %v1936_v29  ;;  %v418_v34 = vunpack.c.h.bf16 %v1936_v29  ;;  %v470_v35 = vadd.f32 %v469_v28, %v455_v27  ;;  %v1336_v36 = vpop.f32.mrb[10].mxu0  ;;  %v335_v45 = vadd.f32 %v334_v32, %v142_v63 }
 0x12a   :  { %v346_v40 = vadd.f32 %v1336_v36, %v157_v21  ;;  %v337_v41 = vpop.f32.mrb[11].mxu0  ;;  %v458_v53 = vmul.f32 %v419_v38, %v419_v38  ;;  %v459_v60 = vmul.f32 %v420_v47, %v420_v47 }
 0x12b   :  { %v432_v43 = vadd.f32 %v431_v30, %v417_v33  ;;  %v456_v44 = vmul.f32 %v417_v33, %v417_v33  ;;  %v338_v46 = vadd.f32 %v337_v41, %v147_v1  ;;  %v457_v50 = vmul.f32 %v418_v34, %v418_v34 }
 0x12c   :  { %v402_v48 = vpack.c.bf16 %v346_v40, %v343_v39 }
 0x12d   :  { %v433_v49 = vadd.f32 %v432_v43, %v418_v34  ;;  %v471_v51 = vadd.f32 %v470_v35, %v456_v44  ;;  %v401_v52 = vpack.c.bf16 %v338_v46, %v335_v45 }
 0x12e   :  { %v1943_v56 = vmax.bf16 %v1461_v5, %v402_v48 }
 0x12f   :  { %v434_v54 = vadd.f32 %v433_v49, %v419_v38  ;;  %v472_v55 = vadd.f32 %v471_v51, %v457_v50  ;;  %v1946_v57 = vmax.bf16 %v1461_v5, %v401_v52  ;;  %v1339_v58 = vpop.f32.mrb[12].mxu0 }
 0x130   :  { %v350_v61 = vpop.f32.mrb[13].mxu0  ;;  %v359_v7 = vadd.f32 %v1339_v58, %v172_v59  ;;  %v423_v10 = vunpack.c.l.bf16 %v1943_v56  ;;  %v424_v17 = vunpack.c.h.bf16 %v1943_v56 }
 0x131   :  { %v473_v63 = vadd.f32 %v472_v55, %v458_v53  ;;  %v421_v1 = vunpack.c.l.bf16 %v1946_v57  ;;  %v422_v3 = vunpack.c.h.bf16 %v1946_v57  ;;  %v435_v4 = vadd.f32 %v434_v54, %v420_v47  ;;  %v1340_v6 = vpop.f32.mrb[14].mxu0 }
 0x132   :  { %v362_v8 = vadd.f32 %v1340_v6, %v177_v62  ;;  %v353_v9 = vpop.f32.mrb[15].mxu0  ;;  %v351_v14 = vadd.f32 %v350_v61, %v162_v37  ;;  %v462_v22 = vmul.f32 %v423_v10, %v423_v10  ;;  %v463_v28 = vmul.f32 %v424_v17, %v424_v17 }
 0x133   :  { %v436_v11 = vadd.f32 %v435_v4, %v421_v1  ;;  %v460_v12 = vmul.f32 %v421_v1, %v421_v1  ;;  %v474_v13 = vadd.f32 %v473_v63, %v459_v60  ;;  %v354_v16 = vadd.f32 %v353_v9, %v167_v42 }
 0x134   :  { %v404_v15 = vpack.c.bf16 %v362_v8, %v359_v7  ;;  %v461_v19 = vmul.f32 %v422_v3, %v422_v3 }
 0x135   :  { %v437_v18 = vadd.f32 %v436_v11, %v422_v3  ;;  %v475_v20 = vadd.f32 %v474_v13, %v460_v12  ;;  %v403_v21 = vpack.c.bf16 %v354_v16, %v351_v14  ;;  %v524_v14 = vpop.permute.xlu0 %523 }
 0x136   :  { %v1953_v25 = vmax.bf16 %v1461_v5, %v404_v15 }
 0x137   :  { %v438_v23 = vadd.f32 %v437_v18, %v423_v10  ;;  %v476_v24 = vadd.f32 %v475_v20, %v461_v19  ;;  %v1956_v27 = vmax.bf16 %v1461_v5, %v403_v21  ;;  %v580_v18 = vpop.permute.xlu1 %579 }
 0x138   :  { %v427_v35 = vunpack.c.l.bf16 %v1953_v25  ;;  %v428_v38 = vunpack.c.h.bf16 %v1953_v25 }
 0x139   :  { %v477_v30 = vadd.f32 %v476_v24, %v462_v22  ;;  %v439_v31 = vadd.f32 %v438_v23, %v424_v17  ;;  %v425_v32 = vunpack.c.l.bf16 %v1956_v27  ;;  %v426_v33 = vunpack.c.h.bf16 %v1956_v27  ;;  %v529_v19 = vpop.permute.xlu0 %528 }
 0x13a   :  { %v466_v42 = vmul.f32 %v427_v35, %v427_v35  ;;  %v467_v45 = vmul.f32 %v428_v38, %v428_v38 }
 0x13b   :  { %v478_v34 = vadd.f32 %v477_v30, %v463_v28  ;;  %v440_v36 = vadd.f32 %v439_v31, %v425_v32  ;;  %v464_v37 = vmul.f32 %v425_v32, %v425_v32  ;;  %v465_v40 = vmul.f32 %v426_v33, %v426_v33  ;;  %v585_v20 = vpop.permute.xlu1 %584 }
 0x13d   :  { %v441_v39 = vadd.f32 %v440_v36, %v426_v33  ;;  %v479_v41 = vadd.f32 %v478_v34, %v464_v37 }
 0x13f   :  { %v442_v43 = vadd.f32 %v441_v39, %v427_v35  ;;  %v480_v44 = vadd.f32 %v479_v41, %v465_v40  ;;  %v590_v22 = vpop.permute.xlu1 %589 }
 0x141   :  { %v443_v46 = vadd.f32 %v442_v43, %v428_v38  ;;  %v481_v47 = vadd.f32 %v480_v44, %v466_v42 }
 0x143   :  { %v444_v48 = vrot.slane %v443_v46, 4  ;;  %v482_v49 = vadd.f32 %v481_v47, %v467_v45  ;;  %v595_v33 = vpop.permute.xlu1 %594 }
 0x145   :  { %v445_v50 = vadd.f32 %v444_v48, %v443_v46  ;;  %v483_v51 = vrot.slane %v482_v49, 4 }
 0x147   :  { %v446_v52 = vrot.slane %v445_v50, 2  ;;  %v484_v53 = vadd.f32 %v483_v51, %v482_v49  ;;  %v600_v39 = vpop.permute.xlu1 %599 }
 0x149   :  { %v447_v54 = vadd.f32 %v446_v52, %v445_v50  ;;  %v485_v55 = vrot.slane %v484_v53, 2 }
 0x14b   :  { %v448_v58 = vrot.slane %v447_v54, 1  ;;  %v486_v59 = vadd.f32 %v485_v55, %v484_v53  ;;  %v605_v43 = vpop.permute.xlu1 %604  ;;  %v1416_v55 = vld [vmem:[%s2066_s5 + $0x8] sm:$0xff]  }
 0x14d   :  { %v449_v60 = vadd.f32 %v448_v58, %v447_v54  ;;  %v487_v61 = vrot.slane %v486_v59, 1  ;;  %v1417_v58 = vld [vmem:[%s2066_s5 + $0x10] sm:$0xff]  }
 0x14f   :  { %v451_v62 = vmul.f32 0.0078125, %v449_v60  ;;  %v488_v63 = vadd.f32 %v487_v61, %v486_v59  ;;  %v610_v49 = vpop.permute.xlu1 %609  ;;  %v1418_v59 = vld [vmem:[%s2066_s5 + $0x18] sm:$0xff]   ;;  %v1419_v60 = vld [vmem:[%s2066_s5 + $0x20] sm:$0xff]   ;;  %v1420_v61 = vld [vmem:[%s2066_s5 + $0x28] sm:$0xff]  }
 0x151   :  { %v489_v1 = vmul.f32 0.0078125, %v488_v63  ;;  %v490_v3 = vmul.f32 %v451_v62, %v451_v62  ;;  %v495_v4 = vpack.c.bf16 %v451_v62, %v451_v62  ;;  %v1421_v62 = vld [vmem:[%s2066_s5 + $0x30] sm:$0xff]   ;;  %v1422_v63 = vld [vmem:[%s2066_s5 + $0x38] sm:$0xff]  }
 0x153   :  { %v491_v6 = vsub.f32 %v489_v1, %v490_v3  ;;  %v502_v7 = vsub.bf16 %v1956_v27, %v495_v4  ;;  %v496_v8 = vsub.bf16 %v1926_v2, %v495_v4  ;;  %v497_v9 = vsub.bf16 %v1923_v0, %v495_v4  ;;  %v534_v2 = vpop.permute.xlu0 %533  ;;  %v615_v53 = vpop.permute.xlu1 %614 }
 0x154   :  { %v498_v10 = vsub.bf16 %v1936_v29, %v495_v4  ;;  %v499_v11 = vsub.bf16 %v1933_v26, %v495_v4  ;;  %v500_v12 = vsub.bf16 %v1946_v57, %v495_v4  ;;  %v501_v13 = vsub.bf16 %v1943_v56, %v495_v4 }
 0x155   :  { %v492_v15 = vmax.f32 %v491_v6, 0.0  ;;  %v503_v16 = vsub.bf16 %v1953_v25, %v495_v4  ;;  %v1462_v1 = vmov 0.0  }
 0x157   :  { %v493_v17 = vadd.f32 1e-05, %v492_v15  ;;  %v539_v57 = vpop.permute.xlu0 %538  ;;  %v665_v4 = vpop.permute.xlu1 %664 }
 0x159   :  { %1423 = vrsqrt.f32 %v493_v17 }
 0x15b   :  { %v544_v36 = vpop.permute.xlu0 %543 }
 0x15f   :  { %v549_v40 = vpop.permute.xlu0 %548 }
 0x163   :  { %v1424_v21 = vpop.eup %1423  ;;  %v554_v46 = vpop.permute.xlu0 %553 }
 0x164   :  { %v504_v0 = vpack.c.bf16 %v1424_v21, %v1424_v21 }
 0x166   :  { %v505_v29 = vmul.bf16 %v504_v0, %v496_v8  ;;  %v506_v23 = vmul.bf16 %v504_v0, %v497_v9  ;;  %v507_v26 = vmul.bf16 %v504_v0, %v498_v10  ;;  %v508_v24 = vmul.bf16 %v504_v0, %v499_v11 }
 0x167   :  { %v509_v27 = vmul.bf16 %v504_v0, %v500_v12  ;;  %v510_v56 = vmul.bf16 %v504_v0, %v501_v13  ;;  %v511_v28 = vmul.bf16 %v504_v0, %v502_v7  ;;  %v512_v30 = vmul.bf16 %v504_v0, %v503_v16  ;;  %v559_v50 = vpop.permute.xlu0 %558  ;;  %v675_v7 = vpop.permute.xlu1 %674 }
 0x168   :  { %v561_v31 = vmul.bf16 %v524_v14, %v505_v29  ;;  %v562_v25 = vmul.bf16 %v529_v19, %v506_v23  ;;  %v563_v35 = vmul.bf16 %v534_v2, %v507_v26  ;;  %v564_v38 = vmul.bf16 %v539_v57, %v508_v24 }
 0x169   :  { %v565_v42 = vmul.bf16 %v544_v36, %v509_v27  ;;  %v566_v45 = vmul.bf16 %v549_v40, %v510_v56  ;;  %v567_v48 = vmul.bf16 %v554_v46, %v511_v28  ;;  %v568_v52 = vmul.bf16 %v559_v50, %v512_v30 }
 0x16a   :  { %v617_v32 = vadd.bf16 %v580_v18, %v561_v31  ;;  %v618_v34 = vadd.bf16 %v585_v20, %v562_v25  ;;  %v619_v37 = vadd.bf16 %v590_v22, %v563_v35  ;;  %v620_v41 = vadd.bf16 %v595_v33, %v564_v38 }
 0x16b   :  { %v621_v44 = vadd.bf16 %v600_v39, %v565_v42  ;;  %v622_v47 = vadd.bf16 %v605_v43, %v566_v45  ;;  %v623_v51 = vadd.bf16 %v610_v49, %v567_v48  ;;  %v624_v54 = vadd.bf16 %v615_v53, %v568_v52  ;;  %v660_v3 = vpop.permute.xlu0 %659  ;;  %v685_v9 = vpop.permute.xlu1 %684 }
 0x16c   :  { %1341 = vmatprep.subr.bf16.mxu1 %v617_v32 }
 0x16d   :  { %1342 = vmatpush3.bf16.msra.mxu1 %v617_v32 }
 0x16e   :  { %1343 = vmatprep.subr.bf16.mxu1 %v618_v34 }
 0x16f   :  { %v670_v6 = vpop.permute.xlu0 %669  ;;  %v695_v13 = vpop.permute.xlu1 %694 }
 0x171   :  { %1344 = vmatpush3.bf16.msra.mxu1 %v618_v34 }
 0x172   :  { %1345 = vmatprep.subr.bf16.mxu1 %v619_v37 }
 0x173   :  { %v680_v8 = vpop.permute.xlu0 %679  ;;  %v705_v22 = vpop.permute.xlu1 %704 }
 0x175   :  { %1346 = vmatpush3.bf16.msra.mxu1 %v619_v37 }
 0x176   :  { %1347 = vmatprep.subr.bf16.mxu1 %v620_v41 }
 0x177   :  { %v690_v11 = vpop.permute.xlu0 %689  ;;  %v715_v39 = vpop.permute.xlu1 %714 }
 0x179   :  { %1348 = vmatpush3.bf16.msra.mxu1 %v620_v41 }
 0x17a   :  { %1349 = vmatprep.subr.bf16.mxu1 %v621_v44 }
 0x17b   :  { %v700_v21 = vpop.permute.xlu0 %699 }
 0x17d   :  { %1350 = vmatpush3.bf16.msra.mxu1 %v621_v44 }
 0x17e   :  { %1351 = vmatprep.subr.bf16.mxu1 %v622_v47 }
 0x17f   :  { %v710_v37 = vpop.permute.xlu0 %709 }
 0x181   :  { %1352 = vmatpush3.bf16.msra.mxu1 %v622_v47 }
 0x182   :  { %1353 = vmatprep.subr.bf16.mxu1 %v623_v51 }
 0x185   :  { %1354 = vmatpush3.bf16.msra.mxu1 %v623_v51 }
 0x186   :  { %1355 = vmatprep.subr.bf16.mxu1 %v624_v54 }
 0x189   :  { %1356 = vmatpush3.bf16.msra.mxu1 %v624_v54 }
 0x18a   :  { %1373 = vmatprep.subr.bf16.mxu1 %v1462_v1 }
 0x18c   :  { %1358 = vmatmul.mubr.bf16.vlgmr.msra.gmra.mrb[0].mxu1 %v1416_v55  ;;  %v720_v55 = vpop.permute.xlu0 %719 }
 0x18d   :  { %1361 = vmatprep.mubr.bf16.mxu1 %v1417_v58 }
 0x194   :  { %1362 = vmatmul.mubr.bf16.gmra.mrb[4].mxu1 %v1418_v59 }
 0x195   :  { %1365 = vmatprep.mubr.bf16.mxu1 %v1419_v60 }
 0x19c   :  { %1366 = vmatmul.mubr.bf16.gmra.mrb[8].mxu1 %v1420_v61 }
 0x19d   :  { %1369 = vmatprep.mubr.bf16.mxu1 %v1421_v62  ;;  %v725_v62 = vpop.permute.xlu1 %724 }
 0x1a4   :  { %1370 = vmatmul.mubr.bf16.gmra.mrb[12].mxu1 %v1422_v63 }
 0x1a5   :  { %1389 = vmatprep.mubr.msk.bf16.mxu1 %vm1463_vm1, %v1462_v1 }
 0x25f   :  { %v1359_v10 = vpop.f32.mrb[0].mxu1 }
 0x260   :  { %v819_v12 = vpop.f32.mrb[1].mxu1  ;;  %v828_v15 = vadd.f32 %v1359_v10, %v670_v6 }
 0x261   :  { %v1360_v14 = vpop.f32.mrb[2].mxu1  ;;  %v820_v18 = vadd.f32 %v819_v12, %v660_v3 }
 0x262   :  { %v831_v16 = vadd.f32 %v1360_v14, %v675_v7  ;;  %v822_v17 = vpop.f32.mrb[3].mxu1 }
 0x263   :  { %v823_v19 = vadd.f32 %v822_v17, %v665_v4 }
 0x264   :  { %v915_v20 = vpack.c.bf16 %v831_v16, %v828_v15 }
 0x265   :  { %v914_v2 = vpack.c.bf16 %v823_v19, %v820_v18  ;;  %v730_v19 = vpop.permute.xlu0 %729 }
 0x266   :  { %v1994_v0 = vmax.bf16 %v1461_v5, %v915_v20 }
 0x267   :  { %v1997_v29 = vmax.bf16 %v1461_v5, %v914_v2  ;;  %v1363_v23 = vpop.f32.mrb[4].mxu1 }
 0x268   :  { %v835_v26 = vpop.f32.mrb[5].mxu1  ;;  %v932_v24 = vunpack.c.l.bf16 %v1994_v0  ;;  %v933_v28 = vunpack.c.h.bf16 %v1994_v0  ;;  %v844_v30 = vadd.f32 %v1363_v23, %v690_v11 }
 0x269   :  { %v930_v57 = vunpack.c.l.bf16 %v1997_v29  ;;  %v931_v27 = vunpack.c.h.bf16 %v1997_v29  ;;  %v1364_v56 = vpop.f32.mrb[6].mxu1  ;;  %v836_v31 = vadd.f32 %v835_v26, %v680_v8 }
 0x26a   :  { %v847_v25 = vadd.f32 %v1364_v56, %v695_v13  ;;  %v838_v32 = vpop.f32.mrb[7].mxu1  ;;  %v970_v40 = vmul.f32 %v932_v24, %v932_v24  ;;  %v971_v45 = vmul.f32 %v933_v28, %v933_v28 }
 0x26b   :  { %v946_v33 = vadd.f32 %v931_v27, %v930_v57  ;;  %v968_v34 = vmul.f32 %v930_v57, %v930_v57  ;;  %v969_v35 = vmul.f32 %v931_v27, %v931_v27  ;;  %v839_v36 = vadd.f32 %v838_v32, %v685_v9 }
 0x26c   :  { %v917_v38 = vpack.c.bf16 %v847_v25, %v844_v30 }
 0x26d   :  { %v947_v41 = vadd.f32 %v946_v33, %v932_v24  ;;  %v984_v42 = vadd.f32 %v969_v35, %v968_v34  ;;  %v916_v43 = vpack.c.bf16 %v839_v36, %v836_v31 }
 0x26e   :  { %v2004_v44 = vmax.bf16 %v1461_v5, %v917_v38 }
 0x26f   :  { %v985_v46 = vadd.f32 %v984_v42, %v970_v40  ;;  %v2007_v47 = vmax.bf16 %v1461_v5, %v916_v43  ;;  %v948_v48 = vadd.f32 %v947_v41, %v933_v28  ;;  %v1367_v49 = vpop.f32.mrb[8].mxu1 }
 0x270   :  { %v851_v50 = vpop.f32.mrb[9].mxu1  ;;  %v936_v58 = vunpack.c.l.bf16 %v2004_v44  ;;  %v860_v59 = vadd.f32 %v1367_v49, %v710_v37  ;;  %v937_v7 = vunpack.c.h.bf16 %v2004_v44 }
 0x271   :  { %v934_v51 = vunpack.c.l.bf16 %v2007_v47  ;;  %v935_v52 = vunpack.c.h.bf16 %v2007_v47  ;;  %v986_v53 = vadd.f32 %v985_v46, %v971_v45  ;;  %v1368_v54 = vpop.f32.mrb[10].mxu1  ;;  %v852_v4 = vadd.f32 %v851_v50, %v700_v21  ;;  %v735_v21 = vpop.permute.xlu1 %734 }
 0x272   :  { %v863_v60 = vadd.f32 %v1368_v54, %v715_v39  ;;  %v854_v61 = vpop.f32.mrb[11].mxu1  ;;  %v974_v13 = vmul.f32 %v936_v58, %v936_v58  ;;  %v975_v20 = vmul.f32 %v937_v7, %v937_v7 }
 0x273   :  { %v949_v63 = vadd.f32 %v948_v48, %v934_v51  ;;  %v972_v3 = vmul.f32 %v934_v51, %v934_v51  ;;  %v855_v6 = vadd.f32 %v854_v61, %v705_v22  ;;  %v973_v10 = vmul.f32 %v935_v52, %v935_v52 }
 0x274   :  { %v919_v8 = vpack.c.bf16 %v863_v60, %v860_v59 }
 0x275   :  { %v950_v9 = vadd.f32 %v949_v63, %v935_v52  ;;  %v987_v11 = vadd.f32 %v986_v53, %v972_v3  ;;  %v918_v12 = vpack.c.bf16 %v855_v6, %v852_v4 }
 0x276   :  { %v2014_v16 = vmax.bf16 %v1461_v5, %v919_v8 }
 0x277   :  { %v951_v14 = vadd.f32 %v950_v9, %v936_v58  ;;  %v988_v15 = vadd.f32 %v987_v11, %v973_v10  ;;  %v2017_v17 = vmax.bf16 %v1461_v5, %v918_v12  ;;  %v1371_v18 = vpop.f32.mrb[12].mxu1 }
 0x278   :  { %v867_v2 = vpop.f32.mrb[13].mxu1  ;;  %v876_v27 = vadd.f32 %v1371_v18, %v730_v19  ;;  %v940_v30 = vunpack.c.l.bf16 %v2014_v16  ;;  %v941_v36 = vunpack.c.h.bf16 %v2014_v16 }
 0x279   :  { %v989_v22 = vadd.f32 %v988_v15, %v974_v13  ;;  %v938_v23 = vunpack.c.l.bf16 %v2017_v17  ;;  %v939_v26 = vunpack.c.h.bf16 %v2017_v17  ;;  %v952_v24 = vadd.f32 %v951_v14, %v937_v7  ;;  %v1372_v57 = vpop.f32.mrb[14].mxu1 }
 0x27a   :  { %v879_v56 = vadd.f32 %v1372_v57, %v735_v21  ;;  %v870_v28 = vpop.f32.mrb[15].mxu1  ;;  %v868_v33 = vadd.f32 %v867_v2, %v720_v55  ;;  %v978_v41 = vmul.f32 %v940_v30, %v940_v30  ;;  %v979_v48 = vmul.f32 %v941_v36, %v941_v36 }
 0x27b   :  { %v953_v31 = vadd.f32 %v952_v24, %v938_v23  ;;  %v976_v25 = vmul.f32 %v938_v23, %v938_v23  ;;  %v990_v32 = vadd.f32 %v989_v22, %v975_v20  ;;  %v871_v35 = vadd.f32 %v870_v28, %v725_v62 }
 0x27c   :  { %v921_v34 = vpack.c.bf16 %v879_v56, %v876_v27  ;;  %v977_v38 = vmul.f32 %v939_v26, %v939_v26 }
 0x27d   :  { %v954_v37 = vadd.f32 %v953_v31, %v939_v26  ;;  %v991_v39 = vadd.f32 %v990_v32, %v976_v25  ;;  %v920_v40 = vpack.c.bf16 %v871_v35, %v868_v33  ;;  %v1040_v35 = vpop.permute.xlu0 %1039 }
 0x27e   :  { %v2024_v45 = vmax.bf16 %v1461_v5, %v921_v34 }
 0x27f   :  { %v955_v42 = vadd.f32 %v954_v37, %v940_v30  ;;  %v992_v43 = vadd.f32 %v991_v39, %v977_v38  ;;  %v928_v46 = vmax.bf16 %v1461_v5, %v920_v40  ;;  %v1096_v37 = vpop.permute.xlu1 %1095 }
 0x280   :  { %v944_v54 = vunpack.c.l.bf16 %v2024_v45  ;;  %v945_v59 = vunpack.c.h.bf16 %v2024_v45 }
 0x281   :  { %v993_v49 = vadd.f32 %v992_v43, %v978_v41  ;;  %v956_v50 = vadd.f32 %v955_v42, %v941_v36  ;;  %v942_v51 = vunpack.c.l.bf16 %v928_v46  ;;  %v943_v52 = vunpack.c.h.bf16 %v928_v46  ;;  %v1045_v38 = vpop.permute.xlu0 %1044 }
 0x282   :  { %v982_v63 = vmul.f32 %v944_v54, %v944_v54  ;;  %v983_v6 = vmul.f32 %v945_v59, %v945_v59 }
 0x283   :  { %v994_v53 = vadd.f32 %v993_v49, %v979_v48  ;;  %v957_v55 = vadd.f32 %v956_v50, %v942_v51  ;;  %v980_v58 = vmul.f32 %v942_v51, %v942_v51  ;;  %v981_v61 = vmul.f32 %v943_v52, %v943_v52  ;;  %v1101_v39 = vpop.permute.xlu1 %1100 }
 0x285   :  { %v958_v60 = vadd.f32 %v957_v55, %v943_v52  ;;  %v995_v62 = vadd.f32 %v994_v53, %v980_v58  ;;  %v1050_v40 = vpop.permute.xlu0 %1049 }
 0x287   :  { %v959_v3 = vadd.f32 %v958_v60, %v944_v54  ;;  %v996_v4 = vadd.f32 %v995_v62, %v981_v61  ;;  %v1106_v43 = vpop.permute.xlu1 %1105 }
 0x289   :  { %v960_v5 = vadd.f32 %v959_v3, %v945_v59  ;;  %v997_v7 = vadd.f32 %v996_v4, %v982_v63 }
 0x28b   :  { %v961_v8 = vrot.slane %v960_v5, 4  ;;  %v998_v9 = vadd.f32 %v997_v7, %v983_v6  ;;  %v1111_v52 = vpop.permute.xlu1 %1110 }
 0x28d   :  { %v962_v10 = vadd.f32 %v961_v8, %v960_v5  ;;  %v999_v11 = vrot.slane %v998_v9, 4 }
 0x28f   :  { %v963_v12 = vrot.slane %v962_v10, 2  ;;  %v1000_v13 = vadd.f32 %v999_v11, %v998_v9  ;;  %v1116_v60 = vpop.permute.xlu1 %1115 }
 0x291   :  { %v964_v14 = vadd.f32 %v963_v12, %v962_v10  ;;  %v1001_v15 = vrot.slane %v1000_v13, 2 }
 0x293   :  { %v965_v18 = vrot.slane %v964_v14, 1  ;;  %v1002_v19 = vadd.f32 %v1001_v15, %v1000_v13  ;;  %v1121_v3 = vpop.permute.xlu1 %1120  ;;  %v1141_v15 = vld [vmem:[%s2070_s9] sm:$0x3]  ;;  %s1464_s9 = smov [#allocation2]  }
 0x295   :  { %v966_v20 = vadd.f32 %v965_v18, %v964_v14  ;;  %v1003_v2 = vrot.slane %v1002_v19, 1 }
 0x297   :  { %v967_v21 = vmul.f32 0.0078125, %v966_v20  ;;  %v1004_v22 = vadd.f32 %v1003_v2, %v1002_v19  ;;  %v1126_v9 = vpop.permute.xlu1 %1125 }
 0x299   :  { %v1005_v23 = vmul.f32 0.0078125, %v1004_v22  ;;  %v1006_v26 = vmul.f32 %v967_v21, %v967_v21  ;;  %v1011_v24 = vpack.c.bf16 %v967_v21, %v967_v21 }
 0x29b   :  { %v1007_v57 = vsub.f32 %v1005_v23, %v1006_v26  ;;  %v1018_v27 = vsub.bf16 %v928_v46, %v1011_v24  ;;  %v1012_v56 = vsub.bf16 %v1997_v29, %v1011_v24  ;;  %v1013_v28 = vsub.bf16 %v1994_v0, %v1011_v24  ;;  %v1131_v13 = vpop.permute.xlu1 %1130 }
 0x29c   :  { %v1014_v30 = vsub.bf16 %v2007_v47, %v1011_v24  ;;  %v1015_v31 = vsub.bf16 %v2004_v44, %v1011_v24  ;;  %v1016_v25 = vsub.bf16 %v2017_v17, %v1011_v24  ;;  %v1017_v32 = vsub.bf16 %v2014_v16, %v1011_v24 }
 0x29d   :  { %v1008_v33 = vmax.f32 %v1007_v57, 0.0  ;;  %v1019_v34 = vsub.bf16 %v2024_v45, %v1011_v24  ;;  %v1055_v45 = vpop.permute.xlu0 %1054 }
 0x29f   :  { %v1009_v36 = vadd.f32 1e-05, %v1008_v33 }
 0x2a1   :  { %1425 = vrsqrt.f32 %v1009_v36  ;;  %v1060_v55 = vpop.permute.xlu0 %1059 }
 0x2a5   :  { %v1065_v61 = vpop.permute.xlu0 %1064 }
 0x2a9   :  { %v1070_v5 = vpop.permute.xlu0 %1069 }
 0x2ab   :  { %v1426_v29 = vpop.eup %1425 }
 0x2ac   :  { %v1020_v0 = vpack.c.bf16 %v1426_v29, %v1426_v29 }
 0x2ad   :  { %v1075_v10 = vpop.permute.xlu0 %1074 }
 0x2ae   :  { %v1027_v41 = vmul.bf16 %v1020_v0, %v1018_v27  ;;  %v1021_v47 = vmul.bf16 %v1020_v0, %v1012_v56  ;;  %v1022_v42 = vmul.bf16 %v1020_v0, %v1013_v28  ;;  %v1023_v44 = vmul.bf16 %v1020_v0, %v1014_v30  ;;  %v1202_v28 = vld [vmem:[%s2072_s11] sm:$0x3]  ;;  %s1235_s11 = sshll.u32 %s1464_s9, 4  ;;  %s1236_s11 = int_to_ptr.vmem [resolvable:$true] %s1235_s11 }
 0x2af   :  { %v1024_v17 = vmul.bf16 %v1020_v0, %v1015_v31  ;;  %v1025_v46 = vmul.bf16 %v1020_v0, %v1016_v25  ;;  %v1026_v16 = vmul.bf16 %v1020_v0, %v1017_v32  ;;  %v1028_v48 = vmul.bf16 %v1020_v0, %v1019_v34  ;;  %s1437_s28 = scalar_lea.vmem %s1236_s11, 64  ;;  %p1442_p1 = scmp.lt.s32.totalorder %s1236_s11, %s1236_s11 }
 0x2b0   :  { %v1077_v49 = vmul.bf16 %v1040_v35, %v1021_v47  ;;  %v1078_v51 = vmul.bf16 %v1045_v38, %v1022_v42  ;;  %v1079_v54 = vmul.bf16 %v1050_v40, %v1023_v44  ;;  %v1083_v8 = vmul.bf16 %v1070_v5, %v1027_v41  ;;  %p1438_p0 = scmp.ne.s32.totalorder %s1236_s11, %s1437_s28  ;;  %p1443_p2 = scmp.lt.s32.totalorder %s1437_s28, %s1437_s28 }
 0x2b1   :  { %v1080_v59 = vmul.bf16 %v1055_v45, %v1024_v17  ;;  %v1081_v63 = vmul.bf16 %v1060_v55, %v1025_v46  ;;  %v1082_v6 = vmul.bf16 %v1065_v61, %v1026_v16  ;;  %v1084_v12 = vmul.bf16 %v1075_v10, %v1028_v48  ;;  %v1146_v18 = vpop.permute.xlu0 %1145 }
 0x2b2   :  { %v1133_v50 = vadd.bf16 %v1096_v37, %v1077_v49  ;;  %v1134_v53 = vadd.bf16 %v1101_v39, %v1078_v51  ;;  %v1135_v58 = vadd.bf16 %v1106_v43, %v1079_v54  ;;  %v1139_v11 = vadd.bf16 %v1126_v9, %v1083_v8  ;;  %p1444_p3 = por %p1443_p2, %p1442_p1 }
 0x2b3   :  { %v1136_v62 = vadd.bf16 %v1111_v52, %v1080_v59  ;;  %v1137_v4 = vadd.bf16 %v1116_v60, %v1081_v63  ;;  %v1138_v7 = vadd.bf16 %v1121_v3, %v1082_v6  ;;  %v1140_v14 = vadd.bf16 %v1131_v13, %v1084_v12 }
 0x2b4   :  { %1374 = vmatpush3.bf16.msra.mxu1 %v1133_v50  ;;  %v1204_v32 = vrot.slane %v1202_v28, 6  ;;  %v1211_v41 = vmul.f32 -0.5, %v1202_v28  ;;  %p1445_p4 = pnand %p1444_p3, %p1438_p0 }
 0x2b5   :  { %1375 = vmatprep.subr.bf16.mxu1 %v1462_v1 }
 0x2b6   :  { %v1212_v42 = vmul.f32 %v1211_v41, %v1202_v28 }
 0x2b8   :  { %1376 = vmatpush3.bf16.msra.mxu1 %v1134_v53 }
 0x2b9   :  { %1377 = vmatprep.subr.bf16.mxu1 %v1462_v1 }
 0x2bc   :  { %1378 = vmatpush3.bf16.msra.mxu1 %v1135_v58 }
 0x2bd   :  { %1379 = vmatprep.subr.bf16.mxu1 %v1462_v1 }
 0x2c0   :  { %1380 = vmatpush3.bf16.msra.mxu1 %v1136_v62 }
 0x2c1   :  { %1381 = vmatprep.subr.bf16.mxu1 %v1462_v1 }
 0x2c4   :  { %1382 = vmatpush3.bf16.msra.mxu1 %v1137_v4 }
 0x2c5   :  { %1383 = vmatprep.subr.bf16.mxu1 %v1462_v1 }
 0x2c8   :  { %1384 = vmatpush3.bf16.msra.mxu1 %v1138_v7 }
 0x2c9   :  { %1385 = vmatprep.subr.bf16.mxu1 %v1462_v1 }
 0x2cc   :  { %1386 = vmatpush3.bf16.msra.mxu1 %v1139_v11 }
 0x2cd   :  { %1387 = vmatprep.subr.bf16.mxu1 %v1462_v1 }
 0x2d0   :  { %1388 = vmatpush3.bf16.msra.mxu1 %v1140_v14 }
 0x2d3   :  { %1390 = vmatmul.mubr.bf16.vlgmr.msra.gmra.mrb[16].mxu1 %v1141_v15 }
 0x3a6   :  { %v1182_v19 = vpop.f32.mrb[16].mxu1 }
 0x3a7   :  { %v1183_v20 = vadd.f32 %v1182_v19, %v1146_v18  ;;  %v1391_v2 = vpop.f32.mrb[17].mxu1 }
 0x3a8   :  { %v1185_v21 = vpop.f32.mrb[18].mxu1 }
 0x3a9   :  { %v1189_v22 = vmin.f32 %v1183_v20, 20.0  ;;  %v1392_v23 = vpop.f32.mrb[19].mxu1  ;;  %vm1188_vm3 = vcmp.gt.f32.partialorder %v1183_v20, 20.0 }
 0x3ab   :  { %v1190_v26 = vmul.f32 1.442695, %v1189_v22 }
 0x3ad   :  { %1427 = vpow2.f32 %v1190_v26 }
 0x3b7   :  { %v1428_v24 = vpop.eup %1427 }
 0x3b8   :  { %v1192_v57 = vadd.f32 1.0, %v1428_v24  ;;  %v1195_v1 = vmul.f32 -0.5, %v1428_v24  ;;  %v1198_v56 = vand.u32 2147483647, %v1428_v24 }
 0x3ba   :  { %1429 = vlog2.f32 %v1192_v57  ;;  %v1196_v27 = vadd.f32 1.0, %v1195_v1  ;;  %vm1199_vm2 = vcmp.lt.f32.partialorder %v1198_v56, 0.0004427343 }
 0x3bc   :  { %v1197_v25 = vmul.f32 %v1428_v24, %v1196_v27 }
 0x3c4   :  { %v1430_v30 = vpop.eup %1429 }
 0x3c5   :  { %v1194_v31 = vmul.f32 0.6931472, %v1430_v30 }
 0x3c7   :  { %v1200_v33 = vsel %vm1199_vm2, %v1197_v25, %v1194_v31 }
 0x3c8   :  { %v1201_v34 = vsel %vm1188_vm3, %v1183_v20, %v1200_v33 }
 0x3c9   :  { %v1206_v35 = vmul.f32 %v1204_v32, %v1201_v34 }
 0x3cb   :  { %v1208_v36 = vrot.slane %v1206_v35, 2 }
 0x3cd   :  { %v1210_v37 = vadd.f32 %v1208_v36, %v1183_v20 }
 0x3cf   :  { %1431 = vtanh.f32 %v1210_v37 }
 0x3d0   :  { %1433 = vlog2.f32 %v1201_v34 }
 0x3d9   :  { %v1432_v38 = vpop.eup %1431 }
 0x3da   :  { %1227 = vst [vmem:[#allocation2] sm:$0x3] %v1432_v38  ;;  %v1221_v39 = vmul.f32 %v1432_v38, %v1432_v38  ;;  %v1434_v29 = vpop.eup %1433 }
 0x3db   :  { %v1214_v47 = vmul.f32 0.6931472, %v1434_v29 }
 0x3dc   :  { %v1222_v40 = vsub.f32 1.0, %v1221_v39 }
 0x3dd   :  { %v1216_v44 = vrot.slane %v1214_v47, 2 }
 0x3de   :  { %v1223_v0 = vadd.f32 1e-07, %v1222_v40 }
 0x3df   :  { %v1218_v43 = vsub.f32 %v1212_v42, %v1216_v44 }
 0x3e0   :  { %1435 = vlog2.f32 %v1223_v0 }
 0x3e1   :  { %v1267_v46 = vadd.f32 -0.9189385, %v1218_v43 }
 0x3ea   :  { %v1436_v17 = vpop.eup %1435 }
 0x3eb   :  { %v1225_v16 = vmul.f32 0.6931472, %v1436_v17 }
 0x3ed   :  { %v1226_v48 = vsub.f32 %v1267_v46, %v1225_v16 }
 0x3ef   :  { %1228 = vst [vmem:[#allocation2 + $0x2] sm:$0x3] %v1226_v48 }
 0x3f0   :  { %1448 = shalt.err (!%p1445_p4)
}
 0x3f1   :  { %s1449_s30 = scalar_lea.hbm %s2073_s12, 64 }
 0x3f2   :  { %p1450_p5 = scmp.ne.s32.totalorder %s2073_s12, %s1449_s30  ;;  %p1453_p6 = scmp.lt.u32.totalorder %s1449_s30, %s2073_s12 }
 0x3f4   :  { %p1455_p7 = pnand %p1453_p6, %p1450_p5 }
 0x3f6   :  { %1458 = shalt.err (!%p1455_p7)
}
 0x3f7   :  { %1238 = dma.vmem_to_hbm [thread:$0]  %s1236_s11, 64, %s2073_s12, [#allocation3]  }
 0x3f8   :  { %1459 = dma.done.wait [#allocation3], 64  }
 0x3f9   :  { %1460 = vsyncadd [#allocation3], 4294967232 }
 0x3fa   :  { %1242 = vsyncpa [#allocation3], 1 }

</bundles_post_ra>
